<compile_context>
chip_gen: v7x
topology: tpu7x:2x2x1
jax: 0.10.0
libtpu: 0.0.40
codegen_flags: <defaults>
</compile_context>

<pallas_src>
import jax
import jax.numpy as jnp
from jax.experimental import pallas as pl
from jax.experimental.pallas import tpu as pltpu

LANE = 128
ROW_TILE_ALIGN = 16                      # bf16 packs 16 sublanes per vreg
_VMEM_BUDGET_BYTES = 24 * 1024 * 1024    # conservative across v5e/v6e/v7x


def _round_up(x, m):
    return ((x + m - 1) // m) * m


def _mlp_kernel(x_ref, w1_ref, b1_ref, w2_ref, b2_ref, o_ref):
    # x_ref:  (tm, D_in)        f32 batch tile (streamed per grid step)
    # w1_ref: (D_in, HIDDEN)    bf16, VMEM-resident
    # b1_ref: (1, HIDDEN)       f32,  VMEM-resident
    # w2_ref: (HIDDEN, D_out_p) bf16, VMEM-resident
    # b2_ref: (1, D_out_p)      f32,  VMEM-resident
    # o_ref:  (tm, D_out_p)     output tile
    x = x_ref[...].astype(w1_ref.dtype)               # VPU cast, hides under MXU
    h = jnp.dot(x, w1_ref[...], preferred_element_type=jnp.float32)
    h = jnp.maximum(h + b1_ref[...], 0.0)             # bias + ReLU in f32
    y = jnp.dot(h.astype(w2_ref.dtype), w2_ref[...],
                preferred_element_type=jnp.float32)
    o_ref[...] = (y + b2_ref[...]).astype(o_ref.dtype)


def prepare_params(w1, b1, w2, b2, *, compute_dtype=jnp.bfloat16):
    """One-time weight preprocessing (call at init, NOT per forward).

    w1: (D_in, HIDDEN), b1: (HIDDEN,)   -- nn.Linear weights transposed to
    w2: (HIDDEN, D_out), b2: (D_out,)      [in_features, out_features] layout.

    Casts MXU operands to `compute_dtype`, pads W2/b2 output features to a
    lane-dense multiple of 128 and reshapes biases to (1, .) rows.
    """
    d_in, hidden = w1.shape
    assert b1.shape == (hidden,), (b1.shape, hidden)
    assert w2.shape[0] == hidden, (w2.shape, hidden)
    d_out = w2.shape[1]
    assert b2.shape == (d_out,), (b2.shape, d_out)

    d_out_p = _round_up(max(d_out, LANE), LANE)
    if d_out_p != d_out:
        w2 = jnp.pad(w2, ((0, 0), (0, d_out_p - d_out)))
        b2 = jnp.pad(b2, ((0, d_out_p - d_out),))

    return dict(
        w1=jnp.asarray(w1, compute_dtype),
        b1=jnp.asarray(b1, jnp.float32).reshape(1, hidden),
        w2=jnp.asarray(w2, compute_dtype),
        b2=jnp.asarray(b2, jnp.float32).reshape(1, d_out_p),
        d_out=d_out,
    )


def logistic_regression_forward(x, params, *, tm=256, out_dtype=None):
    """Fused MLP forward: relu(x @ W1 + b1) @ W2 + b2.

    x: (N, D_in) (f32; cast to bf16 on-chip). params: from prepare_params().
    """
    w1, b1, w2, b2 = params["w1"], params["b1"], params["w2"], params["b2"]
    d_out = params["d_out"]
    n, d_in = x.shape
    assert w1.shape[0] == d_in, (w1.shape, d_in)
    hidden = w1.shape[1]
    d_out_p = w2.shape[1]
    out_dtype = x.dtype if out_dtype is None else out_dtype
    out_isize = jnp.dtype(out_dtype).itemsize

    # Row tile: 16-sublane aligned, and capped so N splits into >=2 tiles
    # whenever possible (both v7x TensorCores get work).
    two_tile_cap = _round_up(pl.cdiv(n, 2), ROW_TILE_ALIGN)
    tm = max(ROW_TILE_ALIGN, min(tm, two_tile_cap))
    tm = _round_up(tm, ROW_TILE_ALIGN)
    grid_m = pl.cdiv(n, tm)

    # VMEM budget: resident weights + double-buffered x/out tiles.
    resident_bytes = (w1.size * w1.dtype.itemsize + w2.size * w2.dtype.itemsize
                      + 4 * (b1.size + b2.size))
    stream_bytes = 2 * tm * (d_in * x.dtype.itemsize + d_out_p * out_isize)
    if resident_bytes + stream_bytes > _VMEM_BUDGET_BYTES:
        # TODO(synk): add a D_in-tiled ("arbitrary" K axis) path with an f32
        # accumulator scratch for feature counts too large for resident W1.
        raise ValueError("weights/tiles exceed the VMEM budget; D_in too large "
                         "for the fully-resident kernel")

    flops = 2 * n * (d_in * hidden + hidden * d_out_p)
    bytes_accessed = (x.size * x.dtype.itemsize + resident_bytes
                      + n * d_out_p * out_isize)
    cost = pl.CostEstimate(flops=flops, transcendentals=0,
                           bytes_accessed=bytes_accessed)

    resident = pl.Buffered(1)   # weights/biases: single VMEM buffer, no re-stream

    out = pl.pallas_call(
        _mlp_kernel,
        out_shape=jax.ShapeDtypeStruct((n, d_out_p), out_dtype),
        grid_spec=pltpu.PrefetchScalarGridSpec(
            num_scalar_prefetch=0,
            grid=(grid_m,),
            in_specs=[
                pl.BlockSpec((tm, d_in), lambda i: (i, 0)),            # x (streamed)
                pl.BlockSpec((d_in, hidden), lambda i: (0, 0),
                             pipeline_mode=resident),                  # W1 (resident)
                pl.BlockSpec((1, hidden), lambda i: (0, 0),
                             pipeline_mode=resident),                  # b1 (resident)
                pl.BlockSpec((hidden, d_out_p), lambda i: (0, 0),
                             pipeline_mode=resident),                  # W2 (resident)
                pl.BlockSpec((1, d_out_p), lambda i: (0, 0),
                             pipeline_mode=resident),                  # b2 (resident)
            ],
            out_specs=pl.BlockSpec((tm, d_out_p), lambda i: (i, 0)),
        ),
        compiler_params=pltpu.CompilerParams(
            dimension_semantics=("parallel",),   # batch tiles shard across TCs
        ),
        cost_estimate=cost,
    )(x, w1, b1, w2, b2)

    if d_out_p != d_out:
        out = out[:, :d_out]
    return out


def _init_linear(key, fan_in, fan_out, dtype=jnp.float32):
    """Deterministic init mimicking nn.Linear default (U(-1/sqrt(fan_in), +))."""
    kw, kb = jax.random.split(key)
    bound = 1.0 / jnp.sqrt(jnp.float32(fan_in))
    w = jax.random.uniform(kw, (fan_in, fan_out), dtype, -bound, bound)
    b = jax.random.uniform(kb, (fan_out,), dtype, -bound, bound)
    return w, b


if __name__ == "__main__":
    # Shapes consistent with LogisticRegression(input_dim, output_dim):
    # hidden fixed at 512 by the module; D_OUT=40 exercises lane padding.
    N, D_IN, HIDDEN, D_OUT = 512, 256, 512, 40

    key = jax.random.PRNGKey(0)
    kx, kxr, k1, k2 = jax.random.split(key, 4)

    x = jax.random.normal(kx, (N, D_IN), jnp.float32)
    w1, b1 = _init_linear(k1, D_IN, HIDDEN)
    w2, b2 = _init_linear(k2, HIDDEN, D_OUT)

    params = prepare_params(w1, b1, w2, b2)       # one-time weight prep

    out = logistic_regression_forward(x, params)
    out = jax.block_until_ready(out)
    assert out.shape == (N, D_OUT)

    # Reference 1: same bf16-operand / f32-accumulate math as the kernel (tight).
    def ref_bf16(xv):
        h = jnp.dot(xv.astype(jnp.bfloat16), w1.astype(jnp.bfloat16),
                    preferred_element_type=jnp.float32) + b1
        h = jnp.maximum(h, 0.0)
        return jnp.dot(h.astype(jnp.bfloat16), w2.astype(jnp.bfloat16),
                       preferred_element_type=jnp.float32) + b2

    assert jnp.allclose(out, ref_bf16(x), atol=1e-2, rtol=1e-2)

    # Reference 2: pure-f32 semantics (loose sanity check).
    ref_f32 = jnp.maximum(x @ w1 + b1, 0.0) @ w2 + b2
    assert jnp.allclose(out, ref_f32, atol=5e-2, rtol=5e-2)

    # Ragged batch: exercises the partial last row tile (no jnp.pad copies).
    Nr = 50
    xr = jax.random.normal(kxr, (Nr, D_IN), jnp.float32)
    outr = jax.block_until_ready(logistic_regression_forward(xr, params))
    assert outr.shape == (Nr, D_OUT)
    assert jnp.allclose(outr, ref_bf16(xr), atol=1e-2, rtol=1e-2)

    print("KERNEL_OK")
</pallas_src>

<mosaic_0001>
module attributes {stable_mosaic.version = 11 : i64} {
  func.func @_mlp_kernel(%arg0: i32, %arg1: memref<256x256xf32, #tpu.memory_space<vmem>>, %arg2: memref<256x512xbf16, #tpu.memory_space<vmem>>, %arg3: memref<1x512xf32, #tpu.memory_space<vmem>>, %arg4: memref<512x128xbf16, #tpu.memory_space<vmem>>, %arg5: memref<1x128xf32, #tpu.memory_space<vmem>>, %arg6: memref<256x128xf32, #tpu.memory_space<vmem>>) attributes {dimension_semantics = [#tpu.dimension_semantics<parallel>], iteration_bounds = array<i64: 2>, scalar_prefetch = 0 : i64, scratch_operands = 0 : i64, tpu.core_type = #tpu.core_type<tc>, window_params = [{transform_indices = @transform_0, window_bounds = array<i64: 256, 256>}, {pipeline_mode = #tpu.pipeline_mode<synchronous>, transform_indices = @transform_1, window_bounds = array<i64: 256, 512>}, {pipeline_mode = #tpu.pipeline_mode<synchronous>, transform_indices = @transform_2, window_bounds = array<i64: 1, 512>}, {pipeline_mode = #tpu.pipeline_mode<synchronous>, transform_indices = @transform_3, window_bounds = array<i64: 512, 128>}, {pipeline_mode = #tpu.pipeline_mode<synchronous>, transform_indices = @transform_4, window_bounds = array<i64: 1, 128>}, {transform_indices = @transform_5, window_bounds = array<i64: 256, 128>}]} {
    %c0 = arith.constant 0 : index
    %c0_0 = arith.constant 0 : index
    %0 = vector.load %arg1[%c0, %c0_0] : memref<256x256xf32, #tpu.memory_space<vmem>>, vector<256x256xf32>
    %1 = arith.truncf %0 : vector<256x256xf32> to vector<256x256xbf16>
    %c0_1 = arith.constant 0 : index
    %c0_2 = arith.constant 0 : index
    %2 = vector.load %arg2[%c0_1, %c0_2] : memref<256x512xbf16, #tpu.memory_space<vmem>>, vector<256x512xbf16>
    %cst = arith.constant dense<0.000000e+00> : vector<256x512xf32>
    %3 = tpu.matmul %1, %2, %cst {dimension_numbers = #tpu.dot_dimension_numbers<[1], [0], [0], [1], [0, 0, 1, 1], [], []>} : vector<256x256xbf16>, vector<256x512xbf16>, vector<256x512xf32> -> vector<256x512xf32>
    %c0_3 = arith.constant 0 : index
    %c0_4 = arith.constant 0 : index
    %4 = vector.load %arg3[%c0_3, %c0_4] : memref<1x512xf32, #tpu.memory_space<vmem>>, vector<1x512xf32>
    %5 = vector.broadcast %4 : vector<1x512xf32> to vector<256x512xf32>
    %6 = arith.addf %3, %5 : vector<256x512xf32>
    %cst_5 = arith.constant 0.000000e+00 : f32
    %7 = vector.broadcast %cst_5 : f32 to vector<256x512xf32>
    %8 = arith.maximumf %6, %7 : vector<256x512xf32>
    %9 = arith.truncf %8 : vector<256x512xf32> to vector<256x512xbf16>
    %c0_6 = arith.constant 0 : index
    %c0_7 = arith.constant 0 : index
    %10 = vector.load %arg4[%c0_6, %c0_7] : memref<512x128xbf16, #tpu.memory_space<vmem>>, vector<512x128xbf16>
    %cst_8 = arith.constant dense<0.000000e+00> : vector<256x128xf32>
    %11 = tpu.matmul %9, %10, %cst_8 {dimension_numbers = #tpu.dot_dimension_numbers<[1], [0], [0], [1], [0, 0, 1, 1], [], []>} : vector<256x512xbf16>, vector<512x128xbf16>, vector<256x128xf32> -> vector<256x128xf32>
    %c0_9 = arith.constant 0 : index
    %c0_10 = arith.constant 0 : index
    %12 = vector.load %arg5[%c0_9, %c0_10] : memref<1x128xf32, #tpu.memory_space<vmem>>, vector<1x128xf32>
    %13 = vector.broadcast %12 : vector<1x128xf32> to vector<256x128xf32>
    %14 = arith.addf %11, %13 : vector<256x128xf32>
    %c0_11 = arith.constant 0 : index
    %c0_12 = arith.constant 0 : index
    %15 = vector.load %arg6[%c0_11, %c0_12] : memref<256x128xf32, #tpu.memory_space<vmem>>, vector<256x128xf32>
    tpu.vector_store %arg6[%c0_11, %c0_12], %14 {strides = array<i32>} : memref<256x128xf32, #tpu.memory_space<vmem>>, vector<256x128xf32>,
    return
  }
  func.func @transform_0(%arg0: i32) -> (i32, i32) {
    %c0_i32 = arith.constant 0 : i32
    %c0_i32_0 = arith.constant 0 : i32
    return %arg0, %c0_i32 : i32, i32
  }
  func.func @transform_1(%arg0: i32) -> (i32, i32) {
    %c0_i32 = arith.constant 0 : i32
    %c0_i32_0 = arith.constant 0 : i32
    %c0_i32_1 = arith.constant 0 : i32
    return %c0_i32, %c0_i32_0 : i32, i32
  }
  func.func @transform_2(%arg0: i32) -> (i32, i32) {
    %c0_i32 = arith.constant 0 : i32
    %c0_i32_0 = arith.constant 0 : i32
    %c0_i32_1 = arith.constant 0 : i32
    return %c0_i32, %c0_i32_0 : i32, i32
  }
  func.func @transform_3(%arg0: i32) -> (i32, i32) {
    %c0_i32 = arith.constant 0 : i32
    %c0_i32_0 = arith.constant 0 : i32
    %c0_i32_1 = arith.constant 0 : i32
    return %c0_i32, %c0_i32_0 : i32, i32
  }
  func.func @transform_4(%arg0: i32) -> (i32, i32) {
    %c0_i32 = arith.constant 0 : i32
    %c0_i32_0 = arith.constant 0 : i32
    %c0_i32_1 = arith.constant 0 : i32
    return %c0_i32, %c0_i32_0 : i32, i32
  }
  func.func @transform_5(%arg0: i32) -> (i32, i32) {
    %c0_i32 = arith.constant 0 : i32
    %c0_i32_0 = arith.constant 0 : i32
    return %arg0, %c0_i32 : i32, i32
  }
}

</mosaic_0001>

<bundles_post_ra>
// kernel: tpu_custom_call.1
= control target key start
LH: loop header
LB: loop body
LE: loop exit
PB: predicated region body
PF: predicated region fallthrough
CT: control target
= control target key end

     0   :  { %10 = vsyncpa [#allocation3], 0  ;;  %s3339_s0 = inlined_call_operand.hbm [shape: f32[512,256], index: 0, kind: input, shape index: {}]   ;;  %s3340_s1 = inlined_call_operand.hbm [shape: bf16[256,512], index: 1, kind: input, shape index: {}]   ;;  %s3341_s2 = inlined_call_operand.vmem [shape: f32[1,512], index: 2, kind: input, shape index: {}]   ;;  %s3342_s3 = inlined_call_operand.hbm [shape: bf16[512,128], index: 3, kind: input, shape index: {}]   ;;  %s3343_s4 = inlined_call_operand.vmem [shape: f32[1,128], index: 4, kind: input, shape index: {}]   ;;  %s3344_s5 = inlined_call_operand.hbm [shape: f32[512,128], index: 5, kind: output, shape index: {}]  }
   0x1   :  { %12 = vsyncpa [#allocation3 + $0x1], 0 }
   0x2   :  { %13 = vsyncpa [#allocation6], 0 }
   0x3   :  { %14 = vsyncpa [#allocation4], 0 }
   0x4   :  { %16 = vsyncpa [#allocation4 + $0x1], 0  ;;  %s2821_s18 = smov 0   ;;  %s2823_s19 = smov 0  }
   0x5   :  { %s2825_s20 = smov 0   ;;  %s2827_s21 = smov 0  }
   0x6 LB: > { %s2842_s22 = sadd.s32 4294967295, %s2779_s21   ;;  %s2079_s23 = sadd.s32 4294967294, %s2779_s21   ;;  %s2779_s21 = sphi %s2827_s21, %s3364_s21   ;;  %s2775_s20 = sphi %s2825_s20, %s3363_s20   ;;  %s2771_s19 = sphi %s2823_s19, %s3362_s19   ;;  %s2767_s18 = sphi %s2821_s18, %s3361_s18  }
   0x7   : > { %p42_p0 = scmp.ne.s32.totalorder %s2771_s19, %s2767_s18  ;;  %p3345_p1 = scmp.eq.s32.totalorder %s2842_s22, 0 }
   0x8   : > { %p156_p3 = scmp.eq.s32.totalorder %s2079_s23, 1  ;;  %p2080_p5 = scmp.ge.s32.totalorder %s2779_s21, 1 }
   0x9   : > { %p2851_p4 = por %p3345_p1, %p42_p0  ;;  %p163_p7 = scmp.lt.s32.totalorder %s2779_s21, 3 }
   0xa   : > { %p2856_p6 = por %p156_p3, %p42_p0  ;;  %s2781_s27 = smov [#allocation5]  }
   0xb   : > { %s3348_s24 = scalar_select %p2851_p4, 1, 0 }
   0xc   : > { %s3349_s25 = scalar_select %p2856_p6, 1, 0 }
   0xd   : > { %p2861_p8 = pnand %p2080_p5, %p163_p7  ;;  %s175_s28 = sshll.u32 %s2781_s27, 4  ;;  %s2865_s28 = int_to_ptr.vmem [resolvable:$true] %s175_s28 }
   0xe   : > { %s2782_s30 = smov [#allocation7]   ;;  %s2623_s9 = scalar_lea.hbm %s3340_s1, 8192 }
   0xf   : > { %p2434_p9 = pneg %p2861_p8  ;;  %s191_s6 = sshll.u32 %s2782_s30, 4  ;;  %s2876_s6 = int_to_ptr.vmem [resolvable:$true] %s191_s6 }
  0x10   : > { %p2624_p12 = scmp.ne.s32.totalorder %s3340_s1, %s2623_s9  ;;  %p2630_p5 = scmp.lt.u32.totalorder %s2623_s9, %s3340_s1 }
  0x11   : > { %p2872_p11 = pnand %p2434_p9, %p3345_p1 }
  0x13   : > { %p2625_p13 = pneg %p2872_p11 }
  0x15   : > { %p2626_p0 = pnand %p2625_p13, %p2624_p12 }
  0x17   : > { %p2627_p3 = pneg %p2626_p0 }
  0x19   : > { %p2632_p7 = pnand %p2630_p5, %p2627_p3 }
  0x1b   : > { %2635 = shalt.err (!%p2632_p7)
}
  0x1c   : > { %s2636_s14 = scalar_lea.vmem %s2865_s28, 8192  ;;  %p2644_p2 = scmp.lt.s32.totalorder %s2865_s28, %s2865_s28 }
  0x1d   : > { %p2637_p9 = scmp.ne.s32.totalorder %s2865_s28, %s2636_s14  ;;  %p2645_p12 = scmp.lt.s32.totalorder %s2636_s14, %s2636_s14 }
  0x1f   : > { %p2639_p10 = pnand %p2637_p9, %p2625_p13  ;;  %p2646_p0 = por %p2645_p12, %p2644_p2 }
  0x21   : > { %p2640_p1 = pneg %p2639_p10 }
  0x23   : > { %p2647_p6 = pnand %p2646_p0, %p2640_p1 }
  0x25   : > { %2650 = shalt.err (!%p2647_p6)
}
  0x26   : > { %s2783_s15 = smov 256   ;;  %s2784_s16 = smov 16  }
  0x27   : > { %2437 = dma.hbm_to_vmem [thread:$0]  (!%p2872_p11), %s3340_s1, 8192, %s2865_s28, [#allocation6], %s2783_s15, %s2783_s15, %s2784_s16  }
  0x28   : > { %s2651_s7 = scalar_lea.hbm %s3342_s3, 4096 }
  0x29   : > { %p2652_p1 = scmp.ne.s32.totalorder %s3342_s3, %s2651_s7  ;;  %p2658_p10 = scmp.lt.u32.totalorder %s2651_s7, %s3342_s3 }
  0x2b   : > { %p2654_p2 = pnand %p2652_p1, %p2625_p13 }
  0x2d   : > { %p2655_p6 = pneg %p2654_p2 }
  0x2f   : > { %p2660_p3 = pnand %p2658_p10, %p2655_p6 }
  0x31   : > { %2663 = shalt.err (!%p2660_p3)
}
  0x32   : > { %s2664_s28 = scalar_lea.vmem %s2876_s6, 4096  ;;  %p2672_p12 = scmp.lt.s32.totalorder %s2876_s6, %s2876_s6 }
  0x33   : > { %p2665_p5 = scmp.ne.s32.totalorder %s2876_s6, %s2664_s28  ;;  %p2673_p0 = scmp.lt.s32.totalorder %s2664_s28, %s2664_s28 }
  0x35   : > { %p2667_p7 = pnand %p2665_p5, %p2625_p13  ;;  %p2674_p1 = por %p2673_p0, %p2672_p12 }
  0x37   : > { %p2668_p9 = pneg %p2667_p7 }
  0x39   : > { %p2675_p2 = pnand %p2674_p1, %p2668_p9 }
  0x3b   : > { %2678 = shalt.err (!%p2675_p2)
}
  0x3c   : > { %s2785_s12 = smov 64   ;;  %s2786_s13 = smov 4  }
  0x3d   : > { %2440 = dma.hbm_to_vmem [thread:$0]  (!%p2872_p11), %s3342_s3, 4096, %s2876_s6, [#allocation6], %s2785_s12, %s2785_s12, %s2786_s13  }
  0x3e   : > { %s2934_s23 = sadd.s32 1, %s2779_s21   ;;  %s29_s30 = sadd.s32 1, %s2775_s20 }
  0x3f   : > { %s26_s27 = ssub.s32 %s2779_s21, %s2934_s23  ;;  %p36_p6 = scmp.ne.s32.totalorder %s2775_s20, %s2771_s19 }
  0x40   : > { %p27_p13 = scmp.eq.s32.totalorder %s26_s27, 0  ;;  %p37_p10 = scmp.eq.s32.totalorder %s2779_s21, 0 }
  0x41   : > { %p3352_p5 = scmp.eq.s32.totalorder %s2842_s22, 1  ;;  %p2451_p9 = scmp.lt.s32.totalorder %s2779_s21, 2 }
  0x42   : > { %s2943_s7 = scalar_select %p27_p13, %s2775_s20, %s29_s30  }
  0x43   : > { %p38_p3 = por %p37_p10, %p36_p6  ;;  %p2947_p7 = por %p3352_p5, %p36_p6 }
  0x44   : > { %s208_s29 = sand.u32 1, %s2775_s20   ;;  %s2196_s6 = sshll.u32 %s2779_s21, 13 }
  0x45   : > { %s3353_s8 = scalar_select %p2947_p7, 1, 0 }
  0x46   : > { %s2084_s9 = sshll.u32 %s208_s29, 9  ;;  %s2957_s28 = scalar_lea.hbm %s3339_s0, %s2196_s6 }
  0x47   : > { %s212_s12 = scalar_lea.vmem [#allocation2], %s2084_s9  ;;  %p2961_p11 = pnand %p2451_p9, %p38_p3 }
  0x48   : > { %s220_s13 = sshll.u32 %s212_s12, 4  ;;  %s2965_s17 = scalar_lea.sflag [#allocation3], %s208_s29  ;;  %s2959_s13 = int_to_ptr.vmem [resolvable:$true] %s220_s13 }
  0x49   : > { %s2679_s27 = scalar_lea.hbm %s2957_s28, 8192  ;;  %p2681_p0 = pneg %p2961_p11 }
  0x4a   : > { %p2680_p12 = scmp.ne.s32.totalorder %s2957_s28, %s2679_s27  ;;  %s2684_s6 = scalar_lea.hbm %s3339_s0, 16384 }
  0x4b   : > { %p2685_p13 = scmp.lt.u32.totalorder %s2957_s28, %s3339_s0  ;;  %p2686_p6 = scmp.lt.u32.totalorder %s2684_s6, %s2679_s27 }
  0x4c   : > { %p2682_p1 = pnand %p2681_p0, %p2680_p12  ;;  %p2688_p3 = scmp.lt.u32.totalorder %s2679_s27, %s2957_s28 }
  0x4d   : > { %p2687_p10 = por %p2686_p6, %p2685_p13 }
  0x4e   : > { %p2683_p2 = pneg %p2682_p1 }
  0x4f   : > { %p2689_p5 = por %p2688_p3, %p2687_p10 }
  0x51   : > { %p2690_p9 = pnand %p2689_p5, %p2683_p2 }
  0x53   : > { %2693 = shalt.err (!%p2690_p9)
}
  0x54   : > { %s2694_s29 = scalar_lea.vmem %s2959_s13, 8192  ;;  %s2787_s12 = smov [#allocation2]  }
  0x55   : > { %p2695_p12 = scmp.ne.s32.totalorder %s2959_s13, %s2694_s29  ;;  %s2699_s30 = sshll.u32 %s2787_s12, 4  ;;  %s2700_s30 = int_to_ptr.vmem [resolvable:$false] %s2699_s30 }
  0x56   : > { %s2701_s9 = scalar_lea.vmem %s2700_s30, 16384  ;;  %p2702_p4 = scmp.lt.s32.totalorder %s2959_s13, %s2700_s30 }
  0x57   : > { %p2697_p1 = pnand %p2695_p12, %p2681_p0  ;;  %p2703_p13 = scmp.lt.s32.totalorder %s2701_s9, %s2694_s29 }
  0x59   : > { %p2698_p7 = pneg %p2697_p1  ;;  %p2704_p6 = por %p2703_p13, %p2702_p4 }
  0x5b   : > { %p2705_p10 = pnand %p2704_p6, %p2698_p7 }
  0x5d   : > { %2708 = shalt.err (!%p2705_p10)
}
  0x5e   : > { %2444 = dma.hbm_to_vmem [thread:$0]  (!%p2961_p11), %s2957_s28, 8192, %s2959_s13, %s2965_s17, %s2783_s15, %s2783_s15, %s2784_s16  }
  0x5f   : > { %232 = sbr.rel (%p2861_p8) target bundleno = 749 (0x2ed), region = 40  ;;  %s2999_s27 = sand.u32 (!%p2861_p8), 1, %s2771_s19  }
  0x60   : > { %s2089_s6 = sshll.u32 (!%p2861_p8), %s2999_s27, 9  ;;  %s235_s10 = scalar_lea.sflag (!%p2861_p8), [#allocation3], %s2999_s27 }
  0x61   : > { %s3003_s11 = scalar_lea.vmem (!%p2861_p8), [#allocation2], %s2089_s6  ;;  %p3355_p4 = scmp.ne.s32.totalorder (!%p2861_p8), %s3348_s24, 0 }
  0x66   : > { %2754 = dma.done.wait (%p3355_p4), %s235_s10, 8192  }
  0x67   : > { %2756 = vsyncadd (%p3355_p4), %s235_s10, 4294959104  ;;  %p3356_p7 = scmp.eq.s32.totalorder %s2842_s22, 0 }
  0x69   : > { %2758 = dma.done.wait (%p3356_p7), [#allocation6], 12288   ;;  %p3357_p8 = pmov %p3356_p7 }
  0x6a   : > { %v2495_v0 = vld [vmem:[#allocation5 + $0x4] ss:$16 sps:$4 sm:$0xff]   ;;  %v2497_v1 = vld [vmem:[#allocation5 + $0xc] ss:$16 sps:$4 sm:$0xff]   ;;  %v2499_v2 = vld [vmem:[#allocation5] ss:$16 sps:$4 sm:$0xff]  }
  0x6b   : > { %2760 = vsyncadd (%p3357_p8), [#allocation6], 4294955008  ;;  %778 = vmatprep.subr.bf16.mxu0 %v2495_v0  ;;  %v2500_v3 = vld [vmem:[#allocation5 + $0x8] ss:$16 sps:$4 sm:$0xff]   ;;  %971 = vmatprep.subr.bf16.mxu1 %v2497_v1  ;;  %v2501_v4 = vld [vmem:[#allocation5 + $0x24] ss:$16 sps:$4 sm:$0xff]  }
  0x6c   : > { %779 = vmatpush1.bf16.msra.mxu0 %v2499_v2  ;;  %972 = vmatpush1.bf16.msra.mxu1 %v2500_v3  ;;  %v2503_v5 = vld [vmem:[#allocation5 + $0x2c] ss:$16 sps:$4 sm:$0xff]   ;;  %v2505_v6 = vld [vmem:[#allocation5 + $0x20] ss:$16 sps:$4 sm:$0xff]   ;;  %v2506_v7 = vld [vmem:[#allocation5 + $0x28] ss:$16 sps:$4 sm:$0xff]  }
  0x6d   : > { %780 = vmatprep.subr.bf16.mxu0 %v2501_v4  ;;  %973 = vmatprep.subr.bf16.mxu1 %v2503_v5  ;;  %v2507_v8 = vld [vmem:[#allocation5 + $0x44] ss:$16 sps:$4 sm:$0xff]   ;;  %v2509_v9 = vld [vmem:[#allocation5 + $0x4c] ss:$16 sps:$4 sm:$0xff]   ;;  %v2511_v10 = vld [vmem:[#allocation5 + $0x40] ss:$16 sps:$4 sm:$0xff]  }
  0x6e   : > { %v2512_v11 = vld [vmem:[#allocation5 + $0x48] ss:$16 sps:$4 sm:$0xff]   ;;  %v2513_v12 = vld [vmem:[#allocation5 + $0x64] ss:$16 sps:$4 sm:$0xff]   ;;  %v2515_v13 = vld [vmem:[#allocation5 + $0x6c] ss:$16 sps:$4 sm:$0xff]  }
  0x6f   : > { %v2517_v14 = vld [vmem:[#allocation5 + $0x60] ss:$16 sps:$4 sm:$0xff]   ;;  %v2518_v15 = vld [vmem:[#allocation5 + $0x68] ss:$16 sps:$4 sm:$0xff]   ;;  %v2519_v16 = vld [vmem:[#allocation5 + $0x84] ss:$16 sps:$4 sm:$0xff]  }
  0x70   : > { %781 = vmatpush1.bf16.msra.mxu0 %v2505_v6  ;;  %974 = vmatpush1.bf16.msra.mxu1 %v2506_v7  ;;  %v2521_v17 = vld [vmem:[#allocation5 + $0x8c] ss:$16 sps:$4 sm:$0xff]   ;;  %v2523_v18 = vld [vmem:[#allocation5 + $0x80] ss:$16 sps:$4 sm:$0xff]   ;;  %v2524_v19 = vld [vmem:[#allocation5 + $0x88] ss:$16 sps:$4 sm:$0xff]  }
  0x71   : > { %782 = vmatprep.subr.bf16.mxu0 %v2507_v8  ;;  %975 = vmatprep.subr.bf16.mxu1 %v2509_v9  ;;  %v2525_v20 = vld [vmem:[#allocation5 + $0xa4] ss:$16 sps:$4 sm:$0xff]   ;;  %v2527_v21 = vld [vmem:[#allocation5 + $0xac] ss:$16 sps:$4 sm:$0xff]   ;;  %v2529_v22 = vld [vmem:[#allocation5 + $0xa0] ss:$16 sps:$4 sm:$0xff]  }
  0x72   : > { %v2530_v23 = vld [vmem:[#allocation5 + $0xa8] ss:$16 sps:$4 sm:$0xff]   ;;  %v2531_v24 = vld [vmem:[#allocation5 + $0xc4] ss:$16 sps:$4 sm:$0xff]   ;;  %v2533_v25 = vld [vmem:[#allocation5 + $0xcc] ss:$16 sps:$4 sm:$0xff]  }
  0x73   : > { %v2535_v26 = vld [vmem:[#allocation5 + $0xc0] ss:$16 sps:$4 sm:$0xff]   ;;  %v2536_v27 = vld [vmem:[#allocation5 + $0xc8] ss:$16 sps:$4 sm:$0xff]   ;;  %v2537_v28 = vld [vmem:[#allocation5 + $0xe4] ss:$16 sps:$4 sm:$0xff]  }
  0x74   : > { %783 = vmatpush1.bf16.msra.mxu0 %v2511_v10  ;;  %976 = vmatpush1.bf16.msra.mxu1 %v2512_v11  ;;  %v2539_v29 = vld [vmem:[#allocation5 + $0xec] ss:$16 sps:$4 sm:$0xff]   ;;  %v2541_v30 = vld [vmem:[#allocation5 + $0xe0] ss:$16 sps:$4 sm:$0xff]   ;;  %v2542_v31 = vld [vmem:[#allocation5 + $0xe8] ss:$16 sps:$4 sm:$0xff]  }
  0x75   : > { %784 = vmatprep.subr.bf16.mxu0 %v2513_v12  ;;  %977 = vmatprep.subr.bf16.mxu1 %v2515_v13  ;;  %v2543_v32 = vld [vmem:[#allocation5 + $0x104] ss:$16 sps:$4 sm:$0xff]   ;;  %v2545_v33 = vld [vmem:[#allocation5 + $0x10c] ss:$16 sps:$4 sm:$0xff]   ;;  %v2547_v34 = vld [vmem:[#allocation5 + $0x100] ss:$16 sps:$4 sm:$0xff]  }
  0x76   : > { %v2548_v35 = vld [vmem:[#allocation5 + $0x108] ss:$16 sps:$4 sm:$0xff]   ;;  %v2549_v36 = vld [vmem:[#allocation5 + $0x124] ss:$16 sps:$4 sm:$0xff]   ;;  %v2551_v37 = vld [vmem:[#allocation5 + $0x12c] ss:$16 sps:$4 sm:$0xff]  }
  0x77   : > { %v2553_v38 = vld [vmem:[#allocation5 + $0x120] ss:$16 sps:$4 sm:$0xff]   ;;  %v2554_v39 = vld [vmem:[#allocation5 + $0x128] ss:$16 sps:$4 sm:$0xff]   ;;  %v2555_v40 = vld [vmem:[#allocation5 + $0x144] ss:$16 sps:$4 sm:$0xff]  }
  0x78   : > { %785 = vmatpush1.bf16.msra.mxu0 %v2517_v14  ;;  %978 = vmatpush1.bf16.msra.mxu1 %v2518_v15  ;;  %v2557_v41 = vld [vmem:[#allocation5 + $0x14c] ss:$16 sps:$4 sm:$0xff]   ;;  %v2559_v42 = vld [vmem:[#allocation5 + $0x140] ss:$16 sps:$4 sm:$0xff]   ;;  %v2560_v43 = vld [vmem:[#allocation5 + $0x148] ss:$16 sps:$4 sm:$0xff]  }
  0x79   : > { %786 = vmatprep.subr.bf16.mxu0 %v2519_v16  ;;  %979 = vmatprep.subr.bf16.mxu1 %v2521_v17  ;;  %v2561_v44 = vld [vmem:[#allocation5 + $0x164] ss:$16 sps:$4 sm:$0xff]   ;;  %v2563_v45 = vld [vmem:[#allocation5 + $0x16c] ss:$16 sps:$4 sm:$0xff]   ;;  %v2565_v48 = vld [vmem:[#allocation5 + $0x160] ss:$16 sps:$4 sm:$0xff]  }
  0x7a   : > { %v277_v46 = vld [vmem:[%s3003_s11 + $0x8] sm:$0xff]  ;;  %v279_v47 = vld [vmem:[%s3003_s11 + $0x18] sm:$0xff]  ;;  %v2567_v51 = vld [vmem:[#allocation5 + $0x184] ss:$16 sps:$4 sm:$0xff]   ;;  %s2092_s28 = sshll.u32 %s2999_s27, 8  ;;  %s2197_s14 = sshll.u32 %s2842_s22, 12 }
  0x7b   : > { %v2566_v49 = vld [vmem:[#allocation5 + $0x168] ss:$16 sps:$4 sm:$0xff]   ;;  %v341_v50 = vpack.c.bf16 %v279_v47, %v277_v46  ;;  %v2569_v52 = vld [vmem:[#allocation5 + $0x18c] ss:$16 sps:$4 sm:$0xff]   ;;  %v2571_v53 = vld [vmem:[#allocation5 + $0x180] ss:$16 sps:$4 sm:$0xff]   ;;  %s3291_s30 = scalar_lea.hbm %s3344_s5, %s2197_s14 }
  0x7c   : > { %787 = vmatpush1.bf16.msra.mxu0 %v2523_v18  ;;  %980 = vmatpush1.bf16.msra.mxu1 %v2524_v19  ;;  %v2572_v54 = vld [vmem:[#allocation5 + $0x188] ss:$16 sps:$4 sm:$0xff]   ;;  %v2573_v55 = vld [vmem:[#allocation5 + $0x1a4] ss:$16 sps:$4 sm:$0xff]   ;;  %v2575_v56 = vld [vmem:[#allocation5 + $0x1ac] ss:$16 sps:$4 sm:$0xff]  }
  0x7d   : > { %788 = vmatprep.subr.bf16.mxu0 %v2525_v20  ;;  %981 = vmatprep.subr.bf16.mxu1 %v2527_v21  ;;  %v2577_v57 = vld [vmem:[#allocation5 + $0x1a0] ss:$16 sps:$4 sm:$0xff]   ;;  %v2578_v58 = vld [vmem:[#allocation5 + $0x1a8] ss:$16 sps:$4 sm:$0xff]   ;;  %v2579_v59 = vld [vmem:[#allocation5 + $0x1c4] ss:$16 sps:$4 sm:$0xff]  }
  0x7e   : > { %810 = vmatprep.mubr.bf16.mxu0 %v341_v50  ;;  %1003 = vmatprep.mubr.bf16.mxu1 %v341_v50  ;;  %v2581_v60 = vld [vmem:[#allocation5 + $0x1cc] ss:$16 sps:$4 sm:$0xff]   ;;  %v2583_v61 = vld [vmem:[#allocation5 + $0x1c0] ss:$16 sps:$4 sm:$0xff]   ;;  %v2584_v62 = vld [vmem:[#allocation5 + $0x1c8] ss:$16 sps:$4 sm:$0xff]  }
  0x7f   : > { %v2585_v63 = vld [vmem:[#allocation5 + $0x1e4] ss:$16 sps:$4 sm:$0xff]   ;;  %v2587_v0 = vld [vmem:[#allocation5 + $0x1ec] ss:$16 sps:$4 sm:$0xff]   ;;  %v2589_v1 = vld [vmem:[#allocation5 + $0x1e0] ss:$16 sps:$4 sm:$0xff]  }
  0x80   : > { %789 = vmatpush1.bf16.msra.mxu0 %v2529_v22  ;;  %982 = vmatpush1.bf16.msra.mxu1 %v2530_v23  ;;  %v2590_v2 = vld [vmem:[#allocation5 + $0x1e8] ss:$16 sps:$4 sm:$0xff]   ;;  %v276_v3 = vld [vmem:[%s3003_s11] sm:$0xff]  ;;  %v278_v4 = vld [vmem:[%s3003_s11 + $0x10] sm:$0xff]  ;;  %s3224_s13 = scalar_lea.vmem [#allocation8], %s2092_s28  ;;  %s1974_s9 = scalar_lea.sflag [#allocation4], %s2999_s27 }
  0x81   : > { %790 = vmatprep.subr.bf16.mxu0 %v2531_v24  ;;  %983 = vmatprep.subr.bf16.mxu1 %v2533_v25  ;;  %v281_v5 = vld [vmem:[%s3003_s11 + $0x28] sm:$0xff]  ;;  %v283_v6 = vld [vmem:[%s3003_s11 + $0x38] sm:$0xff]  ;;  %v2591_v7 = vld [vmem:[#allocation7 + $0x40] sm:$0xff]   ;;  %v340_v9 = vpack.c.bf16 %v278_v4, %v276_v3  ;;  %s1987_s17 = sshll.u32 %s3224_s13, 4  ;;  %p3358_p0 = scmp.ne.s32.totalorder %s3353_s8, 0  ;;  %s3293_s17 = int_to_ptr.vmem [resolvable:$true] %s1987_s17 }
  0x82   : > { %v2593_v8 = vld [vmem:[#allocation7 + $0xc0] sm:$0xff]   ;;  %v343_v10 = vpack.c.bf16 %v283_v6, %v281_v5  ;;  %v2595_v13 = vld [vmem:[#allocation7 + $0x48] sm:$0xff]   ;;  %v282_v15 = vld [vmem:[%s3003_s11 + $0x30] sm:$0xff]  ;;  %s2709_s6 = scalar_lea.vmem %s3293_s17, 4096  ;;  %s2788_s22 = smov [#allocation8]  }
  0x83   : > { %v2592_v11 = vld [vmem:[#allocation7] sm:$0xff]   ;;  %v285_v16 = vld [vmem:[%s3003_s11 + $0x48] sm:$0xff]  ;;  %v287_v18 = vld [vmem:[%s3003_s11 + $0x58] sm:$0xff]  ;;  %p2710_p11 = scmp.ne.s32.totalorder %s3293_s17, %s2709_s6  ;;  %s2713_s10 = sshll.u32 %s2788_s22, 4  ;;  %s2714_s10 = int_to_ptr.vmem [resolvable:$false] %s2713_s10 }
  0x84   : > { %791 = vmatpush1.bf16.msra.mxu0 %v2535_v26  ;;  %984 = vmatpush1.bf16.msra.mxu1 %v2536_v27  ;;  %v2594_v12 = vld [vmem:[#allocation7 + $0x80] sm:$0xff]   ;;  %v2597_v17 = vld [vmem:[#allocation7 + $0xc8] sm:$0xff]   ;;  %v345_v22 = vpack.c.bf16 %v287_v18, %v285_v16  ;;  %v2599_v23 = vld [vmem:[#allocation7 + $0x50] sm:$0xff]   ;;  %p2716_p5 = scmp.lt.s32.totalorder %s3293_s17, %s2714_s10 }
  0x85   : > { %792 = vmatprep.subr.bf16.mxu0 %v2537_v28  ;;  %985 = vmatprep.subr.bf16.mxu1 %v2539_v29  ;;  %v280_v14 = vld [vmem:[%s3003_s11 + $0x20] sm:$0xff]  ;;  %v2596_v19 = vld [vmem:[#allocation7 + $0x8] sm:$0xff]   ;;  %v2600_v24 = vld [vmem:[#allocation7 + $0x10] sm:$0xff]   ;;  %p2711_p2 = pnand %p2710_p11, %p3358_p0 }
  0x86   : > { %v2598_v20 = vld [vmem:[#allocation7 + $0x88] sm:$0xff]   ;;  %v342_v21 = vpack.c.bf16 %v282_v15, %v280_v14  ;;  %v284_v25 = vld [vmem:[%s3003_s11 + $0x40] sm:$0xff]  ;;  %v286_v26 = vld [vmem:[%s3003_s11 + $0x50] sm:$0xff] }
  0x87   : > { %v2601_v27 = vld [vmem:[#allocation7 + $0xd0] sm:$0xff]   ;;  %v289_v28 = vld [vmem:[%s3003_s11 + $0x68] sm:$0xff]  ;;  %v291_v29 = vld [vmem:[%s3003_s11 + $0x78] sm:$0xff]  ;;  %p2712_p3 = pneg %p2711_p2 }
  0x88   : > { %793 = vmatpush1.bf16.msra.mxu0 %v2541_v30  ;;  %986 = vmatpush1.bf16.msra.mxu1 %v2542_v31  ;;  %v2602_v30 = vld [vmem:[#allocation7 + $0x90] sm:$0xff]   ;;  %v2603_v31 = vld [vmem:[#allocation7 + $0x58] sm:$0xff]   ;;  %v2612_v46 = vld [vmem:[#allocation7 + $0x28] sm:$0xff]  }
  0x89   : > { %794 = vmatprep.subr.bf16.mxu0 %v2543_v32  ;;  %987 = vmatprep.subr.bf16.mxu1 %v2545_v33  ;;  %v2604_v32 = vld [vmem:[#allocation7 + $0x18] sm:$0xff]   ;;  %v2613_v47 = vld [vmem:[#allocation7 + $0xe8] sm:$0xff]   ;;  %v306_v14 = vld [vmem:[%s3003_s11 + $0xf0] sm:$0xff] }
  0x8a   : > { %v2605_v33 = vld [vmem:[#allocation7 + $0xd8] sm:$0xff]   ;;  %v301_v3 = vld [vmem:[%s3003_s11 + $0xc8] sm:$0xff] }
  0x8b   : > { %v303_v4 = vld [vmem:[%s3003_s11 + $0xd8] sm:$0xff]  ;;  %v309_v15 = vld [vmem:[%s3003_s11 + $0x108] sm:$0xff] }
  0x8c   : > { %795 = vmatpush1.bf16.msra.mxu0 %v2547_v34  ;;  %988 = vmatpush1.bf16.msra.mxu1 %v2548_v35  ;;  %v344_v34 = vpack.c.bf16 %v286_v26, %v284_v25  ;;  %v2606_v35 = vld [vmem:[#allocation7 + $0x98] sm:$0xff]   ;;  %v353_v6 = vpack.c.bf16 %v303_v4, %v301_v3  ;;  %v312_v25 = vld [vmem:[%s3003_s11 + $0x120] sm:$0xff]  ;;  %v314_v26 = vld [vmem:[%s3003_s11 + $0x130] sm:$0xff] }
  0x8d   : > { %796 = vmatprep.subr.bf16.mxu0 %v2549_v36  ;;  %989 = vmatprep.subr.bf16.mxu1 %v2551_v37  ;;  %v347_v36 = vpack.c.bf16 %v291_v29, %v289_v28  ;;  %v2607_v37 = vld [vmem:[#allocation7 + $0x60] sm:$0xff]   ;;  %v311_v16 = vld [vmem:[%s3003_s11 + $0x118] sm:$0xff]  ;;  %v358_v29 = vpack.c.bf16 %v314_v26, %v312_v25 }
  0x8e   : > { %v357_v18 = vpack.c.bf16 %v311_v16, %v309_v15  ;;  %v319_v28 = vld [vmem:[%s3003_s11 + $0x158] sm:$0xff]  ;;  %v436_v4 = vld [vmem:[%s3341_s2] sm:$0xf] }
  0x90   : > { %797 = vmatpush1.bf16.msra.mxu0 %v2553_v38  ;;  %990 = vmatpush1.bf16.msra.mxu1 %v2554_v39  ;;  %v2608_v38 = vld [vmem:[#allocation7 + $0x20] sm:$0xff]  }
  0x91   : > { %798 = vmatprep.subr.bf16.mxu0 %v2555_v40  ;;  %991 = vmatprep.subr.bf16.mxu1 %v2557_v41  ;;  %v288_v39 = vld [vmem:[%s3003_s11 + $0x60] sm:$0xff]  ;;  %v290_v40 = vld [vmem:[%s3003_s11 + $0x70] sm:$0xff] }
  0x92   : > { %v2609_v41 = vld [vmem:[#allocation7 + $0xe0] sm:$0xff]  }
  0x94   : > { %799 = vmatpush1.bf16.msra.mxu0 %v2559_v42  ;;  %992 = vmatpush1.bf16.msra.mxu1 %v2560_v43  ;;  %v293_v42 = vld [vmem:[%s3003_s11 + $0x88] sm:$0xff]  ;;  %v295_v43 = vld [vmem:[%s3003_s11 + $0x98] sm:$0xff] }
  0x95   : > { %800 = vmatprep.subr.bf16.mxu0 %v2561_v44  ;;  %993 = vmatprep.subr.bf16.mxu1 %v2563_v45  ;;  %v2610_v44 = vld [vmem:[#allocation7 + $0xa0] sm:$0xff]   ;;  %v2611_v45 = vld [vmem:[#allocation7 + $0x68] sm:$0xff]   ;;  %v349_v50 = vpack.c.bf16 %v295_v43, %v293_v42 }
  0x96   : > { %v324_v43 = vld [vmem:[%s3003_s11 + $0x180] sm:$0xff] }
  0x98   : > { %801 = vmatpush1.bf16.msra.mxu0 %v2565_v48  ;;  %994 = vmatpush1.bf16.msra.mxu1 %v2566_v49  ;;  %v346_v48 = vpack.c.bf16 %v290_v40, %v288_v39  ;;  %v2614_v49 = vld [vmem:[#allocation7 + $0xa8] sm:$0xff]   ;;  %v327_v40 = vld [vmem:[%s3003_s11 + $0x198] sm:$0xff] }
  0x99   : > { %802 = vmatprep.subr.bf16.mxu0 %v2567_v51  ;;  %995 = vmatprep.subr.bf16.mxu1 %v2569_v52  ;;  %v2615_v51 = vld [vmem:[#allocation7 + $0x70] sm:$0xff]   ;;  %v325_v39 = vld [vmem:[%s3003_s11 + $0x188] sm:$0xff] }
  0x9a   : > { %v2616_v52 = vld [vmem:[#allocation7 + $0x30] sm:$0xff]   ;;  %v365_v42 = vpack.c.bf16 %v327_v40, %v325_v39 }
  0x9c   : > { %803 = vmatpush1.bf16.msra.mxu0 %v2571_v53  ;;  %996 = vmatpush1.bf16.msra.mxu1 %v2572_v54  ;;  %v292_v53 = vld [vmem:[%s3003_s11 + $0x80] sm:$0xff]  ;;  %v294_v54 = vld [vmem:[%s3003_s11 + $0x90] sm:$0xff] }
  0x9d   : > { %804 = vmatprep.subr.bf16.mxu0 %v2573_v55  ;;  %997 = vmatprep.subr.bf16.mxu1 %v2575_v56  ;;  %v2617_v55 = vld [vmem:[#allocation7 + $0xf0] sm:$0xff]   ;;  %v297_v56 = vld [vmem:[%s3003_s11 + $0xa8] sm:$0xff] }
  0xa0   : > { %805 = vmatpush1.bf16.msra.mxu0 %v2577_v57  ;;  %998 = vmatpush1.bf16.msra.mxu1 %v2578_v58  ;;  %v299_v57 = vld [vmem:[%s3003_s11 + $0xb8] sm:$0xff]  ;;  %v2618_v58 = vld [vmem:[#allocation7 + $0xb0] sm:$0xff]  }
  0xa1   : > { %806 = vmatprep.subr.bf16.mxu0 %v2579_v59  ;;  %999 = vmatprep.subr.bf16.mxu1 %v2581_v60  ;;  %v2619_v59 = vld [vmem:[#allocation7 + $0x78] sm:$0xff]  }
  0xa2   : > { %v2620_v60 = vld [vmem:[#allocation7 + $0x38] sm:$0xff]  }
  0xa4   : > { %807 = vmatpush1.bf16.msra.mxu0 %v2583_v61  ;;  %1000 = vmatpush1.bf16.msra.mxu1 %v2584_v62  ;;  %v2621_v61 = vld [vmem:[#allocation7 + $0xf8] sm:$0xff]   ;;  %v348_v62 = vpack.c.bf16 %v294_v54, %v292_v53 }
  0xa5   : > { %808 = vmatprep.subr.bf16.mxu0 %v2585_v63  ;;  %1001 = vmatprep.subr.bf16.mxu1 %v2587_v0  ;;  %v2622_v63 = vld [vmem:[#allocation7 + $0xb8] sm:$0xff]   ;;  %v351_v0 = vpack.c.bf16 %v299_v57, %v297_v56  ;;  %v334_v56 = vld [vmem:[%s3003_s11 + $0x1d0] sm:$0xff]  ;;  %v337_v57 = vld [vmem:[%s3003_s11 + $0x1e8] sm:$0xff] }
  0xa8   : > { %809 = vmatpush1.bf16.msra.mxu0 %v2589_v1  ;;  %1002 = vmatpush1.bf16.msra.mxu1 %v2590_v2  ;;  %v296_v1 = vld [vmem:[%s3003_s11 + $0xa0] sm:$0xff]  ;;  %v298_v2 = vld [vmem:[%s3003_s11 + $0xb0] sm:$0xff] }
  0xa9   : > { %2198 = vmatprep.subr.bf16.mxu0 %v2591_v7  ;;  %2310 = vmatprep.subr.bf16.mxu1 %v2593_v8  ;;  %v350_v5 = vpack.c.bf16 %v298_v2, %v296_v1  ;;  %v300_v7 = vld [vmem:[%s3003_s11 + $0xc0] sm:$0xff]  ;;  %v302_v8 = vld [vmem:[%s3003_s11 + $0xd0] sm:$0xff] }
  0xab   : > { %811 = vmatmul.mubr.bf16.vlgmr.msra.gmra.mrb[0].mxu0 %v340_v9  ;;  %1004 = vmatmul.mubr.bf16.vlgmr.msra.gmra.mrb[0].mxu1 %v340_v9  ;;  %v305_v9 = vld [vmem:[%s3003_s11 + $0xe8] sm:$0xff] }
  0xac   : > { %820 = vmatprep.mubr.bf16.mxu0 %v343_v10  ;;  %1013 = vmatprep.mubr.bf16.mxu1 %v343_v10  ;;  %v307_v10 = vld [vmem:[%s3003_s11 + $0xf8] sm:$0xff] }
  0xad   : > { %2199 = vmatpush3.bf16.msra.mxu0 %v2592_v11  ;;  %2311 = vmatpush3.bf16.msra.mxu1 %v2594_v12  ;;  %v352_v11 = vpack.c.bf16 %v302_v8, %v300_v7  ;;  %v355_v12 = vpack.c.bf16 %v307_v10, %v305_v9 }
  0xae   : > { %2200 = vmatprep.subr.bf16.mxu0 %v2595_v13  ;;  %2312 = vmatprep.subr.bf16.mxu1 %v2597_v17  ;;  %v304_v13 = vld [vmem:[%s3003_s11 + $0xe0] sm:$0xff] }
  0xaf   : > { %v354_v17 = vpack.c.bf16 %v306_v14, %v304_v13 }
  0xb1   : > { %2201 = vmatpush3.bf16.msra.mxu0 %v2596_v19  ;;  %2313 = vmatpush3.bf16.msra.mxu1 %v2598_v20  ;;  %v308_v19 = vld [vmem:[%s3003_s11 + $0x100] sm:$0xff]  ;;  %v310_v20 = vld [vmem:[%s3003_s11 + $0x110] sm:$0xff] }
  0xb2   : > { %2202 = vmatprep.subr.bf16.mxu0 %v2599_v23  ;;  %2314 = vmatprep.subr.bf16.mxu1 %v2601_v27  ;;  %v356_v23 = vpack.c.bf16 %v310_v20, %v308_v19  ;;  %v317_v27 = vld [vmem:[%s3003_s11 + $0x148] sm:$0xff] }
  0xb3   : > { %821 = vmatmul.mubr.bf16.gmra.mrb[4].mxu0 %v342_v21  ;;  %1014 = vmatmul.mubr.bf16.gmra.mrb[4].mxu1 %v342_v21  ;;  %v313_v21 = vld [vmem:[%s3003_s11 + $0x128] sm:$0xff] }
  0xb4   : > { %830 = vmatprep.mubr.bf16.mxu0 %v345_v22  ;;  %1023 = vmatprep.mubr.bf16.mxu1 %v345_v22  ;;  %v315_v22 = vld [vmem:[%s3003_s11 + $0x138] sm:$0xff] }
  0xb5   : > { %2203 = vmatpush3.bf16.msra.mxu0 %v2600_v24  ;;  %2315 = vmatpush3.bf16.msra.mxu1 %v2602_v30  ;;  %v359_v24 = vpack.c.bf16 %v315_v22, %v313_v21  ;;  %v361_v30 = vpack.c.bf16 %v319_v28, %v317_v27 }
  0xb6   : > { %2204 = vmatprep.subr.bf16.mxu0 %v2603_v31  ;;  %2316 = vmatprep.subr.bf16.mxu1 %v2605_v33  ;;  %v316_v31 = vld [vmem:[%s3003_s11 + $0x140] sm:$0xff]  ;;  %v321_v33 = vld [vmem:[%s3003_s11 + $0x168] sm:$0xff] }
  0xb9   : > { %2205 = vmatpush3.bf16.msra.mxu0 %v2604_v32  ;;  %2317 = vmatpush3.bf16.msra.mxu1 %v2606_v35  ;;  %v318_v32 = vld [vmem:[%s3003_s11 + $0x150] sm:$0xff] }
  0xba   : > { %2206 = vmatprep.subr.bf16.mxu0 %v2607_v37  ;;  %2318 = vmatprep.subr.bf16.mxu1 %v2609_v41  ;;  %v360_v35 = vpack.c.bf16 %v318_v32, %v316_v31  ;;  %v320_v37 = vld [vmem:[%s3003_s11 + $0x160] sm:$0xff] }
  0xbb   : > { %831 = vmatmul.mubr.bf16.gmra.mrb[8].mxu0 %v344_v34  ;;  %1024 = vmatmul.mubr.bf16.gmra.mrb[8].mxu1 %v344_v34  ;;  %v323_v34 = vld [vmem:[%s3003_s11 + $0x178] sm:$0xff] }
  0xbc   : > { %840 = vmatprep.mubr.bf16.mxu0 %v347_v36  ;;  %1033 = vmatprep.mubr.bf16.mxu1 %v347_v36  ;;  %v363_v36 = vpack.c.bf16 %v323_v34, %v321_v33 }
  0xbd   : > { %2207 = vmatpush3.bf16.msra.mxu0 %v2608_v38  ;;  %2319 = vmatpush3.bf16.msra.mxu1 %v2610_v44  ;;  %v322_v38 = vld [vmem:[%s3003_s11 + $0x170] sm:$0xff] }
  0xbe   : > { %2208 = vmatprep.subr.bf16.mxu0 %v2611_v45  ;;  %2320 = vmatprep.subr.bf16.mxu1 %v2613_v47  ;;  %v362_v41 = vpack.c.bf16 %v322_v38, %v320_v37  ;;  %v326_v44 = vld [vmem:[%s3003_s11 + $0x190] sm:$0xff]  ;;  %v329_v45 = vld [vmem:[%s3003_s11 + $0x1a8] sm:$0xff] }
  0xbf   : > { %v364_v47 = vpack.c.bf16 %v326_v44, %v324_v43 }
  0xc1   : > { %2209 = vmatpush3.bf16.msra.mxu0 %v2612_v46  ;;  %2321 = vmatpush3.bf16.msra.mxu1 %v2614_v49  ;;  %v331_v46 = vld [vmem:[%s3003_s11 + $0x1b8] sm:$0xff]  ;;  %v328_v49 = vld [vmem:[%s3003_s11 + $0x1a0] sm:$0xff] }
  0xc2   : > { %2210 = vmatprep.subr.bf16.mxu0 %v2615_v51  ;;  %2322 = vmatprep.subr.bf16.mxu1 %v2617_v55  ;;  %v333_v51 = vld [vmem:[%s3003_s11 + $0x1c8] sm:$0xff]  ;;  %v332_v55 = vld [vmem:[%s3003_s11 + $0x1c0] sm:$0xff] }
  0xc3   : > { %841 = vmatmul.mubr.bf16.gmra.mrb[12].mxu0 %v346_v48  ;;  %1034 = vmatmul.mubr.bf16.gmra.mrb[12].mxu1 %v346_v48  ;;  %v367_v48 = vpack.c.bf16 %v331_v46, %v329_v45 }
  0xc4   : > { %850 = vmatprep.mubr.bf16.mxu0 %v349_v50  ;;  %1043 = vmatprep.mubr.bf16.mxu1 %v349_v50  ;;  %v330_v50 = vld [vmem:[%s3003_s11 + $0x1b0] sm:$0xff] }
  0xc5   : > { %2211 = vmatpush3.bf16.msra.mxu0 %v2616_v52  ;;  %2323 = vmatpush3.bf16.msra.mxu1 %v2618_v58  ;;  %v335_v52 = vld [vmem:[%s3003_s11 + $0x1d8] sm:$0xff]  ;;  %v366_v53 = vpack.c.bf16 %v330_v50, %v328_v49 }
  0xc6   : > { %2212 = vmatprep.subr.bf16.mxu0 %v2619_v59  ;;  %2324 = vmatprep.subr.bf16.mxu1 %v2621_v61  ;;  %v369_v54 = vpack.c.bf16 %v335_v52, %v333_v51  ;;  %v339_v58 = vld [vmem:[%s3003_s11 + $0x1f8] sm:$0xff]  ;;  %v368_v59 = vpack.c.bf16 %v334_v56, %v332_v55  ;;  %v336_v61 = vld [vmem:[%s3003_s11 + $0x1e0] sm:$0xff] }
  0xc9   : > { %2213 = vmatpush3.bf16.msra.mxu0 %v2620_v60  ;;  %2325 = vmatpush3.bf16.msra.mxu1 %v2622_v63  ;;  %v371_v60 = vpack.c.bf16 %v339_v58, %v337_v57 }
  0xcb   : > { %851 = vmatmul.mubr.bf16.gmra.mrb[16].mxu0 %v348_v62  ;;  %1044 = vmatmul.mubr.bf16.gmra.mrb[16].mxu1 %v348_v62  ;;  %v338_v62 = vld [vmem:[%s3003_s11 + $0x1f0] sm:$0xff]  ;;  %s2715_s11 = scalar_lea.vmem %s2714_s10, 8192 }
  0xcc   : > { %860 = vmatprep.mubr.bf16.mxu0 %v351_v0  ;;  %1053 = vmatprep.mubr.bf16.mxu1 %v351_v0  ;;  %v370_v63 = vpack.c.bf16 %v338_v62, %v336_v61  ;;  %v438_v0 = vlaneseq  ;;  %p2717_p9 = scmp.lt.s32.totalorder %s2715_s11, %s2709_s6 }
  0xce   : > { %v439_v1 = vshrl.u32 %v438_v0, 7  ;;  %p2718_p12 = por %p2717_p9, %p2716_p5 }
  0xd0   : > { %v440_v2 = vsub.s32 0, %v439_v1  ;;  %v448_v3 = vsub.s32 2, %v439_v1  ;;  %p2719_p1 = pnand %p2718_p12, %p2712_p3 }
  0xd2   : > { %v3080_v7 = vrot.slane %v436_v4, %v440_v2  ;;  %v3082_v8 = vrot.slane %v436_v4, %v448_v3 }
  0xd3   : > { %861 = vmatmul.mubr.bf16.gmra.mrb[20].mxu0 %v350_v5  ;;  %1054 = vmatmul.mubr.bf16.gmra.mrb[20].mxu1 %v350_v5  ;;  %v444_v5 = vsub.s32 1, %v439_v1 }
  0xd4   : > { %870 = vmatprep.mubr.bf16.mxu0 %v353_v6  ;;  %1063 = vmatprep.mubr.bf16.mxu1 %v353_v6  ;;  %v452_v6 = vsub.s32 3, %v439_v1 }
  0xd5   : > { %v3084_v9 = vrot.slane %v436_v4, %v444_v5 }
  0xd6   : > { %v3086_v10 = vrot.slane %v436_v4, %v452_v6 }
  0xdb   : > { %871 = vmatmul.mubr.bf16.gmra.mrb[24].mxu0 %v352_v11  ;;  %1064 = vmatmul.mubr.bf16.gmra.mrb[24].mxu1 %v352_v11 }
  0xdc   : > { %880 = vmatprep.mubr.bf16.mxu0 %v355_v12  ;;  %1073 = vmatprep.mubr.bf16.mxu1 %v355_v12 }
  0xe3   : > { %881 = vmatmul.mubr.bf16.gmra.mrb[28].mxu0 %v354_v17  ;;  %1074 = vmatmul.mubr.bf16.gmra.mrb[28].mxu1 %v354_v17 }
  0xe4   : > { %890 = vmatprep.mubr.bf16.mxu0 %v357_v18  ;;  %1083 = vmatprep.mubr.bf16.mxu1 %v357_v18 }
  0xeb   : > { %891 = vmatmul.mubr.bf16.gmra.mrb[32].mxu0 %v356_v23  ;;  %1084 = vmatmul.mubr.bf16.gmra.mrb[32].mxu1 %v356_v23 }
  0xec   : > { %900 = vmatprep.mubr.bf16.mxu0 %v359_v24  ;;  %1093 = vmatprep.mubr.bf16.mxu1 %v359_v24 }
  0xf3   : > { %901 = vmatmul.mubr.bf16.gmra.mrb[36].mxu0 %v358_v29  ;;  %1094 = vmatmul.mubr.bf16.gmra.mrb[36].mxu1 %v358_v29 }
  0xf4   : > { %910 = vmatprep.mubr.bf16.mxu0 %v361_v30  ;;  %1103 = vmatprep.mubr.bf16.mxu1 %v361_v30 }
  0xfb   : > { %911 = vmatmul.mubr.bf16.gmra.mrb[40].mxu0 %v360_v35  ;;  %1104 = vmatmul.mubr.bf16.gmra.mrb[40].mxu1 %v360_v35 }
  0xfc   : > { %920 = vmatprep.mubr.bf16.mxu0 %v363_v36  ;;  %1113 = vmatprep.mubr.bf16.mxu1 %v363_v36 }
 0x103   : > { %921 = vmatmul.mubr.bf16.gmra.mrb[44].mxu0 %v362_v41  ;;  %1114 = vmatmul.mubr.bf16.gmra.mrb[44].mxu1 %v362_v41 }
 0x104   : > { %930 = vmatprep.mubr.bf16.mxu0 %v365_v42  ;;  %1123 = vmatprep.mubr.bf16.mxu1 %v365_v42 }
 0x10b   : > { %931 = vmatmul.mubr.bf16.gmra.mrb[48].mxu0 %v364_v47  ;;  %1124 = vmatmul.mubr.bf16.gmra.mrb[48].mxu1 %v364_v47 }
 0x10c   : > { %940 = vmatprep.mubr.bf16.mxu0 %v367_v48  ;;  %1133 = vmatprep.mubr.bf16.mxu1 %v367_v48 }
 0x113   : > { %941 = vmatmul.mubr.bf16.gmra.mrb[52].mxu0 %v366_v53  ;;  %1134 = vmatmul.mubr.bf16.gmra.mrb[52].mxu1 %v366_v53 }
 0x114   : > { %950 = vmatprep.mubr.bf16.mxu0 %v369_v54  ;;  %1143 = vmatprep.mubr.bf16.mxu1 %v369_v54 }
 0x11b   : > { %951 = vmatmul.mubr.bf16.gmra.mrb[56].mxu0 %v368_v59  ;;  %1144 = vmatmul.mubr.bf16.gmra.mrb[56].mxu1 %v368_v59 }
 0x11c   : > { %960 = vmatprep.mubr.bf16.mxu0 %v371_v60  ;;  %1153 = vmatprep.mubr.bf16.mxu1 %v371_v60 }
 0x123   : > { %961 = vmatmul.mubr.bf16.gmra.mrb[60].mxu0 %v370_v63  ;;  %1154 = vmatmul.mubr.bf16.gmra.mrb[60].mxu1 %v370_v63 }
 0x17e   : > { %v812_v11 = vpop.f32.mrb[0].mxu0  ;;  %v1005_v12 = vpop.f32.mrb[0].mxu1 }
 0x17f   : > { %v813_v13 = vadd.f32 %v812_v11, %v3080_v7  ;;  %v1006_v14 = vadd.f32 %v1005_v12, %v3082_v8  ;;  %v814_v15 = vpop.f32.mrb[1].mxu0  ;;  %v1007_v16 = vpop.f32.mrb[1].mxu1 }
 0x180   : > { %v815_v17 = vadd.f32 %v814_v15, %v3084_v9  ;;  %v1008_v18 = vadd.f32 %v1007_v16, %v3086_v10  ;;  %v816_v19 = vpop.f32.mrb[2].mxu0  ;;  %v1009_v20 = vpop.f32.mrb[2].mxu1 }
 0x181   : > { %v1166_v21 = vmax.f32 %v1006_v14, 0.0  ;;  %v817_v22 = vadd.f32 %v816_v19, %v3080_v7  ;;  %v1010_v23 = vadd.f32 %v1009_v20, %v3082_v8  ;;  %v818_v24 = vpop.f32.mrb[3].mxu0  ;;  %v1011_v25 = vpop.f32.mrb[3].mxu1  ;;  %v1164_v29 = vmax.f32 %v813_v13, 0.0 }
 0x182   : > { %v1167_v26 = vmax.f32 %v1008_v18, 0.0  ;;  %v819_v27 = vadd.f32 %v818_v24, %v3084_v9  ;;  %v1012_v28 = vadd.f32 %v1011_v25, %v3086_v10  ;;  %v1165_v32 = vmax.f32 %v815_v17, 0.0 }
 0x183   : > { %v1168_v30 = vmax.f32 %v817_v22, 0.0  ;;  %v1170_v31 = vmax.f32 %v1010_v23, 0.0 }
 0x184   : > { %v1169_v33 = vmax.f32 %v819_v27, 0.0  ;;  %v1171_v34 = vmax.f32 %v1012_v28, 0.0 }
 0x185   : > { %v1292_v35 = vpack.c.bf16 %v1168_v30, %v1164_v29  ;;  %v1294_v36 = vpack.c.bf16 %v1170_v31, %v1166_v21 }
 0x186   : > { %v1293_v37 = vpack.c.bf16 %v1169_v33, %v1165_v32  ;;  %v1295_v38 = vpack.c.bf16 %v1171_v34, %v1167_v26  ;;  %v822_v39 = vpop.f32.mrb[4].mxu0  ;;  %v1015_v40 = vpop.f32.mrb[4].mxu1 }
 0x187   : > { %v823_v41 = vadd.f32 %v822_v39, %v3080_v7  ;;  %v1016_v42 = vadd.f32 %v1015_v40, %v3082_v8  ;;  %v824_v43 = vpop.f32.mrb[5].mxu0  ;;  %v1017_v44 = vpop.f32.mrb[5].mxu1 }
 0x188   : > { %v825_v45 = vadd.f32 %v824_v43, %v3084_v9  ;;  %v1018_v46 = vadd.f32 %v1017_v44, %v3086_v10  ;;  %v826_v47 = vpop.f32.mrb[6].mxu0  ;;  %v1019_v48 = vpop.f32.mrb[6].mxu1  ;;  %1651 = vmatprep.mubr.bf16.mxu0 %v1293_v37  ;;  %1812 = vmatprep.mubr.bf16.mxu1 %v1295_v38 }
 0x189   : > { %v1174_v49 = vmax.f32 %v1016_v42, 0.0  ;;  %v827_v50 = vadd.f32 %v826_v47, %v3080_v7  ;;  %v1020_v51 = vadd.f32 %v1019_v48, %v3082_v8  ;;  %v828_v52 = vpop.f32.mrb[7].mxu0  ;;  %v1021_v53 = vpop.f32.mrb[7].mxu1  ;;  %1652 = vmatmul.mubr.bf16.vlgmr.msra.gmra.mrb[64].mxu0 %v1292_v35  ;;  %1813 = vmatmul.mubr.bf16.vlgmr.msra.gmra.mrb[64].mxu1 %v1294_v36  ;;  %v1172_v57 = vmax.f32 %v823_v41, 0.0 }
 0x18a   : > { %v1175_v54 = vmax.f32 %v1018_v46, 0.0  ;;  %v829_v55 = vadd.f32 %v828_v52, %v3084_v9  ;;  %v1022_v56 = vadd.f32 %v1021_v53, %v3086_v10  ;;  %v1173_v60 = vmax.f32 %v825_v45, 0.0 }
 0x18b   : > { %v1176_v58 = vmax.f32 %v827_v50, 0.0  ;;  %v1178_v59 = vmax.f32 %v1020_v51, 0.0 }
 0x18c   : > { %v1177_v61 = vmax.f32 %v829_v55, 0.0  ;;  %v1179_v62 = vmax.f32 %v1022_v56, 0.0 }
 0x18d   : > { %v1296_v63 = vpack.c.bf16 %v1176_v58, %v1172_v57  ;;  %v1298_v0 = vpack.c.bf16 %v1178_v59, %v1174_v49 }
 0x18e   : > { %v1297_v1 = vpack.c.bf16 %v1177_v61, %v1173_v60  ;;  %v1299_v2 = vpack.c.bf16 %v1179_v62, %v1175_v54  ;;  %v832_v3 = vpop.f32.mrb[8].mxu0  ;;  %v1025_v4 = vpop.f32.mrb[8].mxu1 }
 0x18f   : > { %v833_v5 = vadd.f32 %v832_v3, %v3080_v7  ;;  %v1026_v6 = vadd.f32 %v1025_v4, %v3082_v8  ;;  %v834_v11 = vpop.f32.mrb[9].mxu0  ;;  %v1027_v12 = vpop.f32.mrb[9].mxu1 }
 0x190   : > { %v835_v13 = vadd.f32 %v834_v11, %v3084_v9  ;;  %v1028_v14 = vadd.f32 %v1027_v12, %v3086_v10  ;;  %v836_v15 = vpop.f32.mrb[10].mxu0  ;;  %v1029_v16 = vpop.f32.mrb[10].mxu1  ;;  %1659 = vmatprep.mubr.bf16.mxu0 %v1297_v1  ;;  %1820 = vmatprep.mubr.bf16.mxu1 %v1299_v2 }
 0x191   : > { %v1182_v17 = vmax.f32 %v1026_v6, 0.0  ;;  %v837_v18 = vadd.f32 %v836_v15, %v3080_v7  ;;  %v1030_v19 = vadd.f32 %v1029_v16, %v3082_v8  ;;  %v838_v20 = vpop.f32.mrb[11].mxu0  ;;  %v1031_v21 = vpop.f32.mrb[11].mxu1  ;;  %1660 = vmatmul.mubr.bf16.gmra.mrb[68].mxu0 %v1296_v63  ;;  %1821 = vmatmul.mubr.bf16.gmra.mrb[68].mxu1 %v1298_v0  ;;  %v1180_v25 = vmax.f32 %v833_v5, 0.0 }
 0x192   : > { %v1183_v22 = vmax.f32 %v1028_v14, 0.0  ;;  %v839_v23 = vadd.f32 %v838_v20, %v3084_v9  ;;  %v1032_v24 = vadd.f32 %v1031_v21, %v3086_v10  ;;  %v1181_v28 = vmax.f32 %v835_v13, 0.0 }
 0x193   : > { %v1184_v26 = vmax.f32 %v837_v18, 0.0  ;;  %v1186_v27 = vmax.f32 %v1030_v19, 0.0 }
 0x194   : > { %v1185_v29 = vmax.f32 %v839_v23, 0.0  ;;  %v1187_v30 = vmax.f32 %v1032_v24, 0.0 }
 0x195   : > { %v1300_v31 = vpack.c.bf16 %v1184_v26, %v1180_v25  ;;  %v1302_v32 = vpack.c.bf16 %v1186_v27, %v1182_v17 }
 0x196   : > { %v1301_v33 = vpack.c.bf16 %v1185_v29, %v1181_v28  ;;  %v1303_v34 = vpack.c.bf16 %v1187_v30, %v1183_v22  ;;  %v842_v35 = vpop.f32.mrb[12].mxu0  ;;  %v1035_v36 = vpop.f32.mrb[12].mxu1 }
 0x197   : > { %v843_v37 = vadd.f32 %v842_v35, %v3080_v7  ;;  %v1036_v38 = vadd.f32 %v1035_v36, %v3082_v8  ;;  %v844_v39 = vpop.f32.mrb[13].mxu0  ;;  %v1037_v40 = vpop.f32.mrb[13].mxu1 }
 0x198   : > { %v845_v41 = vadd.f32 %v844_v39, %v3084_v9  ;;  %v1038_v42 = vadd.f32 %v1037_v40, %v3086_v10  ;;  %v846_v43 = vpop.f32.mrb[14].mxu0  ;;  %v1039_v44 = vpop.f32.mrb[14].mxu1  ;;  %1667 = vmatprep.mubr.bf16.mxu0 %v1301_v33  ;;  %1828 = vmatprep.mubr.bf16.mxu1 %v1303_v34 }
 0x199   : > { %v1190_v45 = vmax.f32 %v1036_v38, 0.0  ;;  %v847_v46 = vadd.f32 %v846_v43, %v3080_v7  ;;  %v1040_v47 = vadd.f32 %v1039_v44, %v3082_v8  ;;  %v848_v48 = vpop.f32.mrb[15].mxu0  ;;  %v1041_v49 = vpop.f32.mrb[15].mxu1  ;;  %1668 = vmatmul.mubr.bf16.gmra.mrb[72].mxu0 %v1300_v31  ;;  %1829 = vmatmul.mubr.bf16.gmra.mrb[72].mxu1 %v1302_v32  ;;  %v1188_v53 = vmax.f32 %v843_v37, 0.0 }
 0x19a   : > { %v1191_v50 = vmax.f32 %v1038_v42, 0.0  ;;  %v849_v51 = vadd.f32 %v848_v48, %v3084_v9  ;;  %v1042_v52 = vadd.f32 %v1041_v49, %v3086_v10  ;;  %v1189_v56 = vmax.f32 %v845_v41, 0.0 }
 0x19b   : > { %v1192_v54 = vmax.f32 %v847_v46, 0.0  ;;  %v1194_v55 = vmax.f32 %v1040_v47, 0.0 }
 0x19c   : > { %v1193_v57 = vmax.f32 %v849_v51, 0.0  ;;  %v1195_v58 = vmax.f32 %v1042_v52, 0.0 }
 0x19d   : > { %v1304_v59 = vpack.c.bf16 %v1192_v54, %v1188_v53  ;;  %v1306_v60 = vpack.c.bf16 %v1194_v55, %v1190_v45 }
 0x19e   : > { %v1305_v61 = vpack.c.bf16 %v1193_v57, %v1189_v56  ;;  %v1307_v62 = vpack.c.bf16 %v1195_v58, %v1191_v50  ;;  %v852_v63 = vpop.f32.mrb[16].mxu0  ;;  %v1045_v0 = vpop.f32.mrb[16].mxu1 }
 0x19f   : > { %v853_v1 = vadd.f32 %v852_v63, %v3080_v7  ;;  %v1046_v2 = vadd.f32 %v1045_v0, %v3082_v8  ;;  %v854_v3 = vpop.f32.mrb[17].mxu0  ;;  %v1047_v4 = vpop.f32.mrb[17].mxu1 }
 0x1a0   : > { %v855_v5 = vadd.f32 %v854_v3, %v3084_v9  ;;  %v1048_v6 = vadd.f32 %v1047_v4, %v3086_v10  ;;  %v856_v11 = vpop.f32.mrb[18].mxu0  ;;  %v1049_v12 = vpop.f32.mrb[18].mxu1  ;;  %1675 = vmatprep.mubr.bf16.mxu0 %v1305_v61  ;;  %1836 = vmatprep.mubr.bf16.mxu1 %v1307_v62 }
 0x1a1   : > { %v1198_v13 = vmax.f32 %v1046_v2, 0.0  ;;  %v857_v14 = vadd.f32 %v856_v11, %v3080_v7  ;;  %v1050_v15 = vadd.f32 %v1049_v12, %v3082_v8  ;;  %v858_v16 = vpop.f32.mrb[19].mxu0  ;;  %v1051_v17 = vpop.f32.mrb[19].mxu1  ;;  %1676 = vmatmul.mubr.bf16.gmra.mrb[76].mxu0 %v1304_v59  ;;  %1837 = vmatmul.mubr.bf16.gmra.mrb[76].mxu1 %v1306_v60  ;;  %v1196_v21 = vmax.f32 %v853_v1, 0.0 }
 0x1a2   : > { %v1199_v18 = vmax.f32 %v1048_v6, 0.0  ;;  %v859_v19 = vadd.f32 %v858_v16, %v3084_v9  ;;  %v1052_v20 = vadd.f32 %v1051_v17, %v3086_v10  ;;  %v1197_v24 = vmax.f32 %v855_v5, 0.0 }
 0x1a3   : > { %v1200_v22 = vmax.f32 %v857_v14, 0.0  ;;  %v1202_v23 = vmax.f32 %v1050_v15, 0.0 }
 0x1a4   : > { %v1201_v25 = vmax.f32 %v859_v19, 0.0  ;;  %v1203_v26 = vmax.f32 %v1052_v20, 0.0 }
 0x1a5   : > { %v1308_v27 = vpack.c.bf16 %v1200_v22, %v1196_v21  ;;  %v1310_v28 = vpack.c.bf16 %v1202_v23, %v1198_v13 }
 0x1a6   : > { %v1309_v29 = vpack.c.bf16 %v1201_v25, %v1197_v24  ;;  %v1311_v30 = vpack.c.bf16 %v1203_v26, %v1199_v18  ;;  %v862_v31 = vpop.f32.mrb[20].mxu0  ;;  %v1055_v32 = vpop.f32.mrb[20].mxu1 }
 0x1a7   : > { %v863_v33 = vadd.f32 %v862_v31, %v3080_v7  ;;  %v1056_v34 = vadd.f32 %v1055_v32, %v3082_v8  ;;  %v864_v35 = vpop.f32.mrb[21].mxu0  ;;  %v1057_v36 = vpop.f32.mrb[21].mxu1 }
 0x1a8   : > { %v865_v37 = vadd.f32 %v864_v35, %v3084_v9  ;;  %v1058_v38 = vadd.f32 %v1057_v36, %v3086_v10  ;;  %v866_v39 = vpop.f32.mrb[22].mxu0  ;;  %v1059_v40 = vpop.f32.mrb[22].mxu1  ;;  %1683 = vmatprep.mubr.bf16.mxu0 %v1309_v29  ;;  %1844 = vmatprep.mubr.bf16.mxu1 %v1311_v30 }
 0x1a9   : > { %v1206_v41 = vmax.f32 %v1056_v34, 0.0  ;;  %v867_v42 = vadd.f32 %v866_v39, %v3080_v7  ;;  %v1060_v43 = vadd.f32 %v1059_v40, %v3082_v8  ;;  %v868_v44 = vpop.f32.mrb[23].mxu0  ;;  %v1061_v45 = vpop.f32.mrb[23].mxu1  ;;  %1684 = vmatmul.mubr.bf16.gmra.mrb[80].mxu0 %v1308_v27  ;;  %1845 = vmatmul.mubr.bf16.gmra.mrb[80].mxu1 %v1310_v28  ;;  %v1204_v49 = vmax.f32 %v863_v33, 0.0 }
 0x1aa   : > { %v1207_v46 = vmax.f32 %v1058_v38, 0.0  ;;  %v869_v47 = vadd.f32 %v868_v44, %v3084_v9  ;;  %v1062_v48 = vadd.f32 %v1061_v45, %v3086_v10  ;;  %v1205_v52 = vmax.f32 %v865_v37, 0.0 }
 0x1ab   : > { %v1208_v50 = vmax.f32 %v867_v42, 0.0  ;;  %v1210_v51 = vmax.f32 %v1060_v43, 0.0 }
 0x1ac   : > { %v1209_v53 = vmax.f32 %v869_v47, 0.0  ;;  %v1211_v54 = vmax.f32 %v1062_v48, 0.0 }
 0x1ad   : > { %v1312_v55 = vpack.c.bf16 %v1208_v50, %v1204_v49  ;;  %v1314_v56 = vpack.c.bf16 %v1210_v51, %v1206_v41 }
 0x1ae   : > { %v1313_v57 = vpack.c.bf16 %v1209_v53, %v1205_v52  ;;  %v1315_v58 = vpack.c.bf16 %v1211_v54, %v1207_v46  ;;  %v872_v59 = vpop.f32.mrb[24].mxu0  ;;  %v1065_v60 = vpop.f32.mrb[24].mxu1 }
 0x1af   : > { %v873_v61 = vadd.f32 %v872_v59, %v3080_v7  ;;  %v1066_v62 = vadd.f32 %v1065_v60, %v3082_v8  ;;  %v874_v63 = vpop.f32.mrb[25].mxu0  ;;  %v1067_v0 = vpop.f32.mrb[25].mxu1 }
 0x1b0   : > { %v875_v1 = vadd.f32 %v874_v63, %v3084_v9  ;;  %v1068_v2 = vadd.f32 %v1067_v0, %v3086_v10  ;;  %v876_v3 = vpop.f32.mrb[26].mxu0  ;;  %v1069_v4 = vpop.f32.mrb[26].mxu1  ;;  %1691 = vmatprep.mubr.bf16.mxu0 %v1313_v57  ;;  %1852 = vmatprep.mubr.bf16.mxu1 %v1315_v58 }
 0x1b1   : > { %v1214_v5 = vmax.f32 %v1066_v62, 0.0  ;;  %v877_v6 = vadd.f32 %v876_v3, %v3080_v7  ;;  %v1070_v11 = vadd.f32 %v1069_v4, %v3082_v8  ;;  %v878_v12 = vpop.f32.mrb[27].mxu0  ;;  %v1071_v13 = vpop.f32.mrb[27].mxu1  ;;  %1692 = vmatmul.mubr.bf16.gmra.mrb[84].mxu0 %v1312_v55  ;;  %1853 = vmatmul.mubr.bf16.gmra.mrb[84].mxu1 %v1314_v56  ;;  %v1212_v17 = vmax.f32 %v873_v61, 0.0 }
 0x1b2   : > { %v1215_v14 = vmax.f32 %v1068_v2, 0.0  ;;  %v879_v15 = vadd.f32 %v878_v12, %v3084_v9  ;;  %v1072_v16 = vadd.f32 %v1071_v13, %v3086_v10  ;;  %v1213_v20 = vmax.f32 %v875_v1, 0.0 }
 0x1b3   : > { %v1216_v18 = vmax.f32 %v877_v6, 0.0  ;;  %v1218_v19 = vmax.f32 %v1070_v11, 0.0 }
 0x1b4   : > { %v1217_v21 = vmax.f32 %v879_v15, 0.0  ;;  %v1219_v22 = vmax.f32 %v1072_v16, 0.0 }
 0x1b5   : > { %v1316_v23 = vpack.c.bf16 %v1216_v18, %v1212_v17  ;;  %v1318_v24 = vpack.c.bf16 %v1218_v19, %v1214_v5 }
 0x1b6   : > { %v1317_v25 = vpack.c.bf16 %v1217_v21, %v1213_v20  ;;  %v1319_v26 = vpack.c.bf16 %v1219_v22, %v1215_v14  ;;  %v882_v27 = vpop.f32.mrb[28].mxu0  ;;  %v1075_v28 = vpop.f32.mrb[28].mxu1 }
 0x1b7   : > { %v883_v29 = vadd.f32 %v882_v27, %v3080_v7  ;;  %v1076_v30 = vadd.f32 %v1075_v28, %v3082_v8  ;;  %v884_v31 = vpop.f32.mrb[29].mxu0  ;;  %v1077_v32 = vpop.f32.mrb[29].mxu1 }
 0x1b8   : > { %v885_v33 = vadd.f32 %v884_v31, %v3084_v9  ;;  %v1078_v34 = vadd.f32 %v1077_v32, %v3086_v10  ;;  %v886_v35 = vpop.f32.mrb[30].mxu0  ;;  %v1079_v36 = vpop.f32.mrb[30].mxu1  ;;  %1699 = vmatprep.mubr.bf16.mxu0 %v1317_v25  ;;  %1860 = vmatprep.mubr.bf16.mxu1 %v1319_v26 }
 0x1b9   : > { %v1222_v37 = vmax.f32 %v1076_v30, 0.0  ;;  %v887_v38 = vadd.f32 %v886_v35, %v3080_v7  ;;  %v1080_v39 = vadd.f32 %v1079_v36, %v3082_v8  ;;  %v888_v40 = vpop.f32.mrb[31].mxu0  ;;  %v1081_v41 = vpop.f32.mrb[31].mxu1  ;;  %1700 = vmatmul.mubr.bf16.gmra.mrb[88].mxu0 %v1316_v23  ;;  %1861 = vmatmul.mubr.bf16.gmra.mrb[88].mxu1 %v1318_v24  ;;  %v1220_v45 = vmax.f32 %v883_v29, 0.0 }
 0x1ba   : > { %v1223_v42 = vmax.f32 %v1078_v34, 0.0  ;;  %v889_v43 = vadd.f32 %v888_v40, %v3084_v9  ;;  %v1082_v44 = vadd.f32 %v1081_v41, %v3086_v10  ;;  %v1221_v48 = vmax.f32 %v885_v33, 0.0 }
 0x1bb   : > { %v1224_v46 = vmax.f32 %v887_v38, 0.0  ;;  %v1226_v47 = vmax.f32 %v1080_v39, 0.0 }
 0x1bc   : > { %v1225_v49 = vmax.f32 %v889_v43, 0.0  ;;  %v1227_v50 = vmax.f32 %v1082_v44, 0.0 }
 0x1bd   : > { %v1320_v51 = vpack.c.bf16 %v1224_v46, %v1220_v45  ;;  %v1322_v52 = vpack.c.bf16 %v1226_v47, %v1222_v37 }
 0x1be   : > { %v1321_v53 = vpack.c.bf16 %v1225_v49, %v1221_v48  ;;  %v1323_v54 = vpack.c.bf16 %v1227_v50, %v1223_v42  ;;  %v892_v55 = vpop.f32.mrb[32].mxu0  ;;  %v1085_v56 = vpop.f32.mrb[32].mxu1 }
 0x1bf   : > { %v893_v57 = vadd.f32 %v892_v55, %v3080_v7  ;;  %v1086_v58 = vadd.f32 %v1085_v56, %v3082_v8  ;;  %v894_v59 = vpop.f32.mrb[33].mxu0  ;;  %v1087_v60 = vpop.f32.mrb[33].mxu1 }
 0x1c0   : > { %v895_v61 = vadd.f32 %v894_v59, %v3084_v9  ;;  %v1088_v62 = vadd.f32 %v1087_v60, %v3086_v10  ;;  %v896_v63 = vpop.f32.mrb[34].mxu0  ;;  %v1089_v0 = vpop.f32.mrb[34].mxu1  ;;  %1707 = vmatprep.mubr.bf16.mxu0 %v1321_v53  ;;  %1868 = vmatprep.mubr.bf16.mxu1 %v1323_v54 }
 0x1c1   : > { %v1230_v1 = vmax.f32 %v1086_v58, 0.0  ;;  %v897_v2 = vadd.f32 %v896_v63, %v3080_v7  ;;  %v1090_v3 = vadd.f32 %v1089_v0, %v3082_v8  ;;  %v898_v4 = vpop.f32.mrb[35].mxu0  ;;  %v1091_v5 = vpop.f32.mrb[35].mxu1  ;;  %1708 = vmatmul.mubr.bf16.gmra.mrb[92].mxu0 %v1320_v51  ;;  %1869 = vmatmul.mubr.bf16.gmra.mrb[92].mxu1 %v1322_v52  ;;  %v1228_v13 = vmax.f32 %v893_v57, 0.0 }
 0x1c2   : > { %v1231_v6 = vmax.f32 %v1088_v62, 0.0  ;;  %v899_v11 = vadd.f32 %v898_v4, %v3084_v9  ;;  %v1092_v12 = vadd.f32 %v1091_v5, %v3086_v10  ;;  %v1229_v16 = vmax.f32 %v895_v61, 0.0 }
 0x1c3   : > { %v1232_v14 = vmax.f32 %v897_v2, 0.0  ;;  %v1234_v15 = vmax.f32 %v1090_v3, 0.0 }
 0x1c4   : > { %v1233_v17 = vmax.f32 %v899_v11, 0.0  ;;  %v1235_v18 = vmax.f32 %v1092_v12, 0.0 }
 0x1c5   : > { %v1324_v19 = vpack.c.bf16 %v1232_v14, %v1228_v13  ;;  %v1326_v20 = vpack.c.bf16 %v1234_v15, %v1230_v1 }
 0x1c6   : > { %v1325_v21 = vpack.c.bf16 %v1233_v17, %v1229_v16  ;;  %v1327_v22 = vpack.c.bf16 %v1235_v18, %v1231_v6  ;;  %v902_v23 = vpop.f32.mrb[36].mxu0  ;;  %v1095_v24 = vpop.f32.mrb[36].mxu1 }
 0x1c7   : > { %v903_v25 = vadd.f32 %v902_v23, %v3080_v7  ;;  %v1096_v26 = vadd.f32 %v1095_v24, %v3082_v8  ;;  %v904_v27 = vpop.f32.mrb[37].mxu0  ;;  %v1097_v28 = vpop.f32.mrb[37].mxu1 }
 0x1c8   : > { %v905_v29 = vadd.f32 %v904_v27, %v3084_v9  ;;  %v1098_v30 = vadd.f32 %v1097_v28, %v3086_v10  ;;  %v906_v31 = vpop.f32.mrb[38].mxu0  ;;  %v1099_v32 = vpop.f32.mrb[38].mxu1  ;;  %1715 = vmatprep.mubr.bf16.mxu0 %v1325_v21  ;;  %1876 = vmatprep.mubr.bf16.mxu1 %v1327_v22 }
 0x1c9   : > { %v1238_v33 = vmax.f32 %v1096_v26, 0.0  ;;  %v907_v34 = vadd.f32 %v906_v31, %v3080_v7  ;;  %v1100_v35 = vadd.f32 %v1099_v32, %v3082_v8  ;;  %v908_v36 = vpop.f32.mrb[39].mxu0  ;;  %v1101_v37 = vpop.f32.mrb[39].mxu1  ;;  %1716 = vmatmul.mubr.bf16.gmra.mrb[96].mxu0 %v1324_v19  ;;  %1877 = vmatmul.mubr.bf16.gmra.mrb[96].mxu1 %v1326_v20  ;;  %v1236_v41 = vmax.f32 %v903_v25, 0.0 }
 0x1ca   : > { %v1239_v38 = vmax.f32 %v1098_v30, 0.0  ;;  %v909_v39 = vadd.f32 %v908_v36, %v3084_v9  ;;  %v1102_v40 = vadd.f32 %v1101_v37, %v3086_v10  ;;  %v1237_v44 = vmax.f32 %v905_v29, 0.0 }
 0x1cb   : > { %v1240_v42 = vmax.f32 %v907_v34, 0.0  ;;  %v1242_v43 = vmax.f32 %v1100_v35, 0.0 }
 0x1cc   : > { %v1241_v45 = vmax.f32 %v909_v39, 0.0  ;;  %v1243_v46 = vmax.f32 %v1102_v40, 0.0 }
 0x1cd   : > { %v1328_v47 = vpack.c.bf16 %v1240_v42, %v1236_v41  ;;  %v1330_v48 = vpack.c.bf16 %v1242_v43, %v1238_v33 }
 0x1ce   : > { %v1329_v49 = vpack.c.bf16 %v1241_v45, %v1237_v44  ;;  %v1331_v50 = vpack.c.bf16 %v1243_v46, %v1239_v38  ;;  %v912_v51 = vpop.f32.mrb[40].mxu0  ;;  %v1105_v52 = vpop.f32.mrb[40].mxu1 }
 0x1cf   : > { %v913_v53 = vadd.f32 %v912_v51, %v3080_v7  ;;  %v1106_v54 = vadd.f32 %v1105_v52, %v3082_v8  ;;  %v914_v55 = vpop.f32.mrb[41].mxu0  ;;  %v1107_v56 = vpop.f32.mrb[41].mxu1 }
 0x1d0   : > { %v915_v57 = vadd.f32 %v914_v55, %v3084_v9  ;;  %v1108_v58 = vadd.f32 %v1107_v56, %v3086_v10  ;;  %v916_v59 = vpop.f32.mrb[42].mxu0  ;;  %v1109_v60 = vpop.f32.mrb[42].mxu1  ;;  %1723 = vmatprep.mubr.bf16.mxu0 %v1329_v49  ;;  %1884 = vmatprep.mubr.bf16.mxu1 %v1331_v50 }
 0x1d1   : > { %v1246_v61 = vmax.f32 %v1106_v54, 0.0  ;;  %v917_v62 = vadd.f32 %v916_v59, %v3080_v7  ;;  %v1110_v63 = vadd.f32 %v1109_v60, %v3082_v8  ;;  %v918_v0 = vpop.f32.mrb[43].mxu0  ;;  %v1111_v1 = vpop.f32.mrb[43].mxu1  ;;  %1724 = vmatmul.mubr.bf16.gmra.mrb[100].mxu0 %v1328_v47  ;;  %1885 = vmatmul.mubr.bf16.gmra.mrb[100].mxu1 %v1330_v48  ;;  %v1244_v5 = vmax.f32 %v913_v53, 0.0 }
 0x1d2   : > { %v1247_v2 = vmax.f32 %v1108_v58, 0.0  ;;  %v919_v3 = vadd.f32 %v918_v0, %v3084_v9  ;;  %v1112_v4 = vadd.f32 %v1111_v1, %v3086_v10  ;;  %v1245_v12 = vmax.f32 %v915_v57, 0.0 }
 0x1d3   : > { %v1248_v6 = vmax.f32 %v917_v62, 0.0  ;;  %v1250_v11 = vmax.f32 %v1110_v63, 0.0 }
 0x1d4   : > { %v1249_v13 = vmax.f32 %v919_v3, 0.0  ;;  %v1251_v14 = vmax.f32 %v1112_v4, 0.0 }
 0x1d5   : > { %v1332_v15 = vpack.c.bf16 %v1248_v6, %v1244_v5  ;;  %v1334_v16 = vpack.c.bf16 %v1250_v11, %v1246_v61 }
 0x1d6   : > { %v1333_v17 = vpack.c.bf16 %v1249_v13, %v1245_v12  ;;  %v1335_v18 = vpack.c.bf16 %v1251_v14, %v1247_v2  ;;  %v922_v19 = vpop.f32.mrb[44].mxu0  ;;  %v1115_v20 = vpop.f32.mrb[44].mxu1 }
 0x1d7   : > { %v923_v21 = vadd.f32 %v922_v19, %v3080_v7  ;;  %v1116_v22 = vadd.f32 %v1115_v20, %v3082_v8  ;;  %v924_v23 = vpop.f32.mrb[45].mxu0  ;;  %v1117_v24 = vpop.f32.mrb[45].mxu1 }
 0x1d8   : > { %v925_v25 = vadd.f32 %v924_v23, %v3084_v9  ;;  %v1118_v26 = vadd.f32 %v1117_v24, %v3086_v10  ;;  %v926_v27 = vpop.f32.mrb[46].mxu0  ;;  %v1119_v28 = vpop.f32.mrb[46].mxu1  ;;  %1731 = vmatprep.mubr.bf16.mxu0 %v1333_v17  ;;  %1892 = vmatprep.mubr.bf16.mxu1 %v1335_v18 }
 0x1d9   : > { %v1254_v29 = vmax.f32 %v1116_v22, 0.0  ;;  %v927_v30 = vadd.f32 %v926_v27, %v3080_v7  ;;  %v1120_v31 = vadd.f32 %v1119_v28, %v3082_v8  ;;  %v928_v32 = vpop.f32.mrb[47].mxu0  ;;  %v1121_v33 = vpop.f32.mrb[47].mxu1  ;;  %1732 = vmatmul.mubr.bf16.gmra.mrb[104].mxu0 %v1332_v15  ;;  %1893 = vmatmul.mubr.bf16.gmra.mrb[104].mxu1 %v1334_v16  ;;  %v1252_v37 = vmax.f32 %v923_v21, 0.0 }
 0x1da   : > { %v1255_v34 = vmax.f32 %v1118_v26, 0.0  ;;  %v929_v35 = vadd.f32 %v928_v32, %v3084_v9  ;;  %v1122_v36 = vadd.f32 %v1121_v33, %v3086_v10  ;;  %v1253_v40 = vmax.f32 %v925_v25, 0.0 }
 0x1db   : > { %v1256_v38 = vmax.f32 %v927_v30, 0.0  ;;  %v1258_v39 = vmax.f32 %v1120_v31, 0.0 }
 0x1dc   : > { %v1257_v41 = vmax.f32 %v929_v35, 0.0  ;;  %v1259_v42 = vmax.f32 %v1122_v36, 0.0 }
 0x1dd   : > { %v1336_v43 = vpack.c.bf16 %v1256_v38, %v1252_v37  ;;  %v1338_v44 = vpack.c.bf16 %v1258_v39, %v1254_v29 }
 0x1de   : > { %v1337_v45 = vpack.c.bf16 %v1257_v41, %v1253_v40  ;;  %v1339_v46 = vpack.c.bf16 %v1259_v42, %v1255_v34  ;;  %v932_v47 = vpop.f32.mrb[48].mxu0  ;;  %v1125_v48 = vpop.f32.mrb[48].mxu1 }
 0x1df   : > { %v933_v49 = vadd.f32 %v932_v47, %v3080_v7  ;;  %v1126_v50 = vadd.f32 %v1125_v48, %v3082_v8  ;;  %v934_v51 = vpop.f32.mrb[49].mxu0  ;;  %v1127_v52 = vpop.f32.mrb[49].mxu1 }
 0x1e0   : > { %v935_v53 = vadd.f32 %v934_v51, %v3084_v9  ;;  %v1128_v54 = vadd.f32 %v1127_v52, %v3086_v10  ;;  %v936_v55 = vpop.f32.mrb[50].mxu0  ;;  %v1129_v56 = vpop.f32.mrb[50].mxu1  ;;  %1739 = vmatprep.mubr.bf16.mxu0 %v1337_v45  ;;  %1900 = vmatprep.mubr.bf16.mxu1 %v1339_v46 }
 0x1e1   : > { %v1262_v57 = vmax.f32 %v1126_v50, 0.0  ;;  %v937_v58 = vadd.f32 %v936_v55, %v3080_v7  ;;  %v1130_v59 = vadd.f32 %v1129_v56, %v3082_v8  ;;  %v938_v60 = vpop.f32.mrb[51].mxu0  ;;  %v1131_v61 = vpop.f32.mrb[51].mxu1  ;;  %1740 = vmatmul.mubr.bf16.gmra.mrb[108].mxu0 %v1336_v43  ;;  %1901 = vmatmul.mubr.bf16.gmra.mrb[108].mxu1 %v1338_v44  ;;  %v1260_v1 = vmax.f32 %v933_v49, 0.0 }
 0x1e2   : > { %v1263_v62 = vmax.f32 %v1128_v54, 0.0  ;;  %v939_v63 = vadd.f32 %v938_v60, %v3084_v9  ;;  %v1132_v0 = vadd.f32 %v1131_v61, %v3086_v10  ;;  %v1261_v4 = vmax.f32 %v935_v53, 0.0 }
 0x1e3   : > { %v1264_v2 = vmax.f32 %v937_v58, 0.0  ;;  %v1266_v3 = vmax.f32 %v1130_v59, 0.0 }
 0x1e4   : > { %v1265_v5 = vmax.f32 %v939_v63, 0.0  ;;  %v1267_v6 = vmax.f32 %v1132_v0, 0.0 }
 0x1e5   : > { %v1340_v11 = vpack.c.bf16 %v1264_v2, %v1260_v1  ;;  %v1342_v12 = vpack.c.bf16 %v1266_v3, %v1262_v57 }
 0x1e6   : > { %v1341_v13 = vpack.c.bf16 %v1265_v5, %v1261_v4  ;;  %v1343_v14 = vpack.c.bf16 %v1267_v6, %v1263_v62  ;;  %v942_v15 = vpop.f32.mrb[52].mxu0  ;;  %v1135_v16 = vpop.f32.mrb[52].mxu1 }
 0x1e7   : > { %v943_v17 = vadd.f32 %v942_v15, %v3080_v7  ;;  %v1136_v18 = vadd.f32 %v1135_v16, %v3082_v8  ;;  %v944_v19 = vpop.f32.mrb[53].mxu0  ;;  %v1137_v20 = vpop.f32.mrb[53].mxu1 }
 0x1e8   : > { %v945_v21 = vadd.f32 %v944_v19, %v3084_v9  ;;  %v1138_v22 = vadd.f32 %v1137_v20, %v3086_v10  ;;  %v946_v23 = vpop.f32.mrb[54].mxu0  ;;  %v1139_v24 = vpop.f32.mrb[54].mxu1  ;;  %1747 = vmatprep.mubr.bf16.mxu0 %v1341_v13  ;;  %1908 = vmatprep.mubr.bf16.mxu1 %v1343_v14 }
 0x1e9   : > { %v1270_v25 = vmax.f32 %v1136_v18, 0.0  ;;  %v947_v26 = vadd.f32 %v946_v23, %v3080_v7  ;;  %v1140_v27 = vadd.f32 %v1139_v24, %v3082_v8  ;;  %v948_v28 = vpop.f32.mrb[55].mxu0  ;;  %v1141_v29 = vpop.f32.mrb[55].mxu1  ;;  %1748 = vmatmul.mubr.bf16.gmra.mrb[112].mxu0 %v1340_v11  ;;  %1909 = vmatmul.mubr.bf16.gmra.mrb[112].mxu1 %v1342_v12  ;;  %v1268_v33 = vmax.f32 %v943_v17, 0.0 }
 0x1ea   : > { %v1271_v30 = vmax.f32 %v1138_v22, 0.0  ;;  %v949_v31 = vadd.f32 %v948_v28, %v3084_v9  ;;  %v1142_v32 = vadd.f32 %v1141_v29, %v3086_v10  ;;  %v1269_v36 = vmax.f32 %v945_v21, 0.0 }
 0x1eb   : > { %v1272_v34 = vmax.f32 %v947_v26, 0.0  ;;  %v1274_v35 = vmax.f32 %v1140_v27, 0.0 }
 0x1ec   : > { %v1273_v37 = vmax.f32 %v949_v31, 0.0  ;;  %v1275_v38 = vmax.f32 %v1142_v32, 0.0 }
 0x1ed   : > { %v1344_v39 = vpack.c.bf16 %v1272_v34, %v1268_v33  ;;  %v1346_v40 = vpack.c.bf16 %v1274_v35, %v1270_v25 }
 0x1ee   : > { %v1345_v41 = vpack.c.bf16 %v1273_v37, %v1269_v36  ;;  %v1347_v42 = vpack.c.bf16 %v1275_v38, %v1271_v30  ;;  %v952_v43 = vpop.f32.mrb[56].mxu0  ;;  %v1145_v44 = vpop.f32.mrb[56].mxu1 }
 0x1ef   : > { %v953_v45 = vadd.f32 %v952_v43, %v3080_v7  ;;  %v1146_v46 = vadd.f32 %v1145_v44, %v3082_v8  ;;  %v954_v47 = vpop.f32.mrb[57].mxu0  ;;  %v1147_v48 = vpop.f32.mrb[57].mxu1 }
 0x1f0   : > { %v955_v49 = vadd.f32 %v954_v47, %v3084_v9  ;;  %v1148_v50 = vadd.f32 %v1147_v48, %v3086_v10  ;;  %v956_v51 = vpop.f32.mrb[58].mxu0  ;;  %v1149_v52 = vpop.f32.mrb[58].mxu1  ;;  %1755 = vmatprep.mubr.bf16.mxu0 %v1345_v41  ;;  %1916 = vmatprep.mubr.bf16.mxu1 %v1347_v42 }
 0x1f1   : > { %v1278_v53 = vmax.f32 %v1146_v46, 0.0  ;;  %v957_v54 = vadd.f32 %v956_v51, %v3080_v7  ;;  %v1150_v55 = vadd.f32 %v1149_v52, %v3082_v8  ;;  %v958_v56 = vpop.f32.mrb[59].mxu0  ;;  %v1151_v57 = vpop.f32.mrb[59].mxu1  ;;  %1756 = vmatmul.mubr.bf16.gmra.mrb[116].mxu0 %v1344_v39  ;;  %1917 = vmatmul.mubr.bf16.gmra.mrb[116].mxu1 %v1346_v40  ;;  %v1276_v61 = vmax.f32 %v953_v45, 0.0 }
 0x1f2   : > { %v1279_v58 = vmax.f32 %v1148_v50, 0.0  ;;  %v959_v59 = vadd.f32 %v958_v56, %v3084_v9  ;;  %v1152_v60 = vadd.f32 %v1151_v57, %v3086_v10  ;;  %v1277_v0 = vmax.f32 %v955_v49, 0.0 }
 0x1f3   : > { %v1280_v62 = vmax.f32 %v957_v54, 0.0  ;;  %v1282_v63 = vmax.f32 %v1150_v55, 0.0 }
 0x1f4   : > { %v1281_v1 = vmax.f32 %v959_v59, 0.0  ;;  %v1283_v2 = vmax.f32 %v1152_v60, 0.0 }
 0x1f5   : > { %v1348_v3 = vpack.c.bf16 %v1280_v62, %v1276_v61  ;;  %v1350_v4 = vpack.c.bf16 %v1282_v63, %v1278_v53 }
 0x1f6   : > { %v1349_v5 = vpack.c.bf16 %v1281_v1, %v1277_v0  ;;  %v1351_v6 = vpack.c.bf16 %v1283_v2, %v1279_v58  ;;  %v962_v11 = vpop.f32.mrb[60].mxu0  ;;  %v1155_v12 = vpop.f32.mrb[60].mxu1 }
 0x1f7   : > { %v963_v13 = vadd.f32 %v962_v11, %v3080_v7  ;;  %v1156_v14 = vadd.f32 %v1155_v12, %v3082_v8  ;;  %v964_v15 = vpop.f32.mrb[61].mxu0  ;;  %v1157_v16 = vpop.f32.mrb[61].mxu1 }
 0x1f8   : > { %v965_v17 = vadd.f32 %v964_v15, %v3084_v9  ;;  %v1158_v18 = vadd.f32 %v1157_v16, %v3086_v10  ;;  %v966_v19 = vpop.f32.mrb[62].mxu0  ;;  %v1159_v20 = vpop.f32.mrb[62].mxu1  ;;  %1763 = vmatprep.mubr.bf16.mxu0 %v1349_v5  ;;  %1924 = vmatprep.mubr.bf16.mxu1 %v1351_v6 }
 0x1f9   : > { %v1286_v21 = vmax.f32 %v1156_v14, 0.0  ;;  %v967_v22 = vadd.f32 %v966_v19, %v3080_v7  ;;  %v1160_v23 = vadd.f32 %v1159_v20, %v3082_v8  ;;  %v968_v24 = vpop.f32.mrb[63].mxu0  ;;  %v1161_v25 = vpop.f32.mrb[63].mxu1  ;;  %1764 = vmatmul.mubr.bf16.gmra.mrb[120].mxu0 %v1348_v3  ;;  %1925 = vmatmul.mubr.bf16.gmra.mrb[120].mxu1 %v1350_v4  ;;  %v1284_v29 = vmax.f32 %v963_v13, 0.0 }
 0x1fa   : > { %v1287_v26 = vmax.f32 %v1158_v18, 0.0  ;;  %v969_v27 = vadd.f32 %v968_v24, %v3084_v9  ;;  %v1162_v28 = vadd.f32 %v1161_v25, %v3086_v10  ;;  %v1285_v32 = vmax.f32 %v965_v17, 0.0  ;;  %v3219_v9 = vld [vmem:[%s3343_s4] ss:$0 sm:$0xff] }
 0x1fb   : > { %v1288_v30 = vmax.f32 %v967_v22, 0.0  ;;  %v1290_v31 = vmax.f32 %v1160_v23, 0.0 }
 0x1fc   : > { %v1289_v33 = vmax.f32 %v969_v27, 0.0  ;;  %v1291_v34 = vmax.f32 %v1162_v28, 0.0 }
 0x1fd   : > { %v1352_v35 = vpack.c.bf16 %v1288_v30, %v1284_v29  ;;  %v1354_v7 = vpack.c.bf16 %v1290_v31, %v1286_v21 }
 0x1fe   : > { %v1353_v36 = vpack.c.bf16 %v1289_v33, %v1285_v32  ;;  %v1355_v8 = vpack.c.bf16 %v1291_v34, %v1287_v26 }
 0x200   : > { %1771 = vmatprep.mubr.bf16.mxu0 %v1353_v36  ;;  %1932 = vmatprep.mubr.bf16.mxu1 %v1355_v8 }
 0x201   : > { %1772 = vmatmul.mubr.bf16.gmra.mrb[124].mxu0 %v1352_v35  ;;  %1933 = vmatmul.mubr.bf16.gmra.mrb[124].mxu1 %v1354_v7 }
 0x25c   : > { %v2214_v37 = vpop.f32.mrb[64].mxu0  ;;  %v2326_v38 = vpop.f32.mrb[64].mxu1 }
 0x25d   : > { %v2215_v10 = vpop.f32.mrb[65].mxu0  ;;  %v2327_v39 = vpop.f32.mrb[65].mxu1 }
 0x25e   : > { %v2216_v40 = vadd.f32 %v2215_v10, %v2214_v37  ;;  %v2328_v41 = vadd.f32 %v2327_v39, %v2326_v38  ;;  %v2217_v42 = vpop.f32.mrb[66].mxu0  ;;  %v2329_v43 = vpop.f32.mrb[66].mxu1 }
 0x25f   : > { %v2218_v44 = vpop.f32.mrb[67].mxu0  ;;  %v2330_v45 = vpop.f32.mrb[67].mxu1 }
 0x260   : > { %v1654_v46 = vadd.f32 %v2216_v40, %v3219_v9  ;;  %v2219_v47 = vadd.f32 %v2218_v44, %v2217_v42  ;;  %v2331_v48 = vadd.f32 %v2330_v45, %v2329_v43 }
 0x262   : > { %v1815_v49 = vadd.f32 %v2328_v41, %v1654_v46  ;;  %v1657_v50 = vadd.f32 %v2219_v47, %v3219_v9 }
 0x264   : > { %1941 = vst [vmem:[%s3224_s13] sm:$0xff] %v1815_v49  ;;  %v1818_v51 = vadd.f32 %v2331_v48, %v1657_v50  ;;  %v2220_v52 = vpop.f32.mrb[68].mxu0  ;;  %v2332_v53 = vpop.f32.mrb[68].mxu1 }
 0x265   : > { %v2221_v54 = vpop.f32.mrb[69].mxu0  ;;  %v2333_v55 = vpop.f32.mrb[69].mxu1 }
 0x266   : > { %1942 = vst [vmem:[%s3224_s13 + $0x8] sm:$0xff] %v1818_v51  ;;  %v2222_v56 = vadd.f32 %v2221_v54, %v2220_v52  ;;  %v2334_v57 = vadd.f32 %v2333_v55, %v2332_v53  ;;  %v2223_v58 = vpop.f32.mrb[70].mxu0  ;;  %v2335_v59 = vpop.f32.mrb[70].mxu1 }
 0x267   : > { %v2224_v60 = vpop.f32.mrb[71].mxu0  ;;  %v2336_v61 = vpop.f32.mrb[71].mxu1 }
 0x268   : > { %v1662_v62 = vadd.f32 %v2222_v56, %v3219_v9  ;;  %v2225_v63 = vadd.f32 %v2224_v60, %v2223_v58  ;;  %v2337_v0 = vadd.f32 %v2336_v61, %v2335_v59 }
 0x26a   : > { %v1823_v1 = vadd.f32 %v2334_v57, %v1662_v62  ;;  %v1665_v2 = vadd.f32 %v2225_v63, %v3219_v9 }
 0x26c   : > { %1943 = vst [vmem:[%s3224_s13 + $0x10] sm:$0xff] %v1823_v1  ;;  %v1826_v3 = vadd.f32 %v2337_v0, %v1665_v2  ;;  %v2226_v4 = vpop.f32.mrb[72].mxu0  ;;  %v2338_v5 = vpop.f32.mrb[72].mxu1 }
 0x26d   : > { %v2227_v6 = vpop.f32.mrb[73].mxu0  ;;  %v2339_v11 = vpop.f32.mrb[73].mxu1 }
 0x26e   : > { %1944 = vst [vmem:[%s3224_s13 + $0x18] sm:$0xff] %v1826_v3  ;;  %v2228_v12 = vadd.f32 %v2227_v6, %v2226_v4  ;;  %v2340_v13 = vadd.f32 %v2339_v11, %v2338_v5  ;;  %v2229_v14 = vpop.f32.mrb[74].mxu0  ;;  %v2341_v15 = vpop.f32.mrb[74].mxu1 }
 0x26f   : > { %v2230_v16 = vpop.f32.mrb[75].mxu0  ;;  %v2342_v17 = vpop.f32.mrb[75].mxu1 }
 0x270   : > { %v1670_v18 = vadd.f32 %v2228_v12, %v3219_v9  ;;  %v2231_v19 = vadd.f32 %v2230_v16, %v2229_v14  ;;  %v2343_v20 = vadd.f32 %v2342_v17, %v2341_v15 }
 0x272   : > { %v1831_v21 = vadd.f32 %v2340_v13, %v1670_v18  ;;  %v1673_v22 = vadd.f32 %v2231_v19, %v3219_v9 }
 0x274   : > { %1945 = vst [vmem:[%s3224_s13 + $0x20] sm:$0xff] %v1831_v21  ;;  %v1834_v23 = vadd.f32 %v2343_v20, %v1673_v22  ;;  %v2232_v24 = vpop.f32.mrb[76].mxu0  ;;  %v2344_v25 = vpop.f32.mrb[76].mxu1 }
 0x275   : > { %v2233_v26 = vpop.f32.mrb[77].mxu0  ;;  %v2345_v27 = vpop.f32.mrb[77].mxu1 }
 0x276   : > { %1946 = vst [vmem:[%s3224_s13 + $0x28] sm:$0xff] %v1834_v23  ;;  %v2234_v28 = vadd.f32 %v2233_v26, %v2232_v24  ;;  %v2346_v29 = vadd.f32 %v2345_v27, %v2344_v25  ;;  %v2235_v30 = vpop.f32.mrb[78].mxu0  ;;  %v2347_v31 = vpop.f32.mrb[78].mxu1 }
 0x277   : > { %v2236_v32 = vpop.f32.mrb[79].mxu0  ;;  %v2348_v33 = vpop.f32.mrb[79].mxu1 }
 0x278   : > { %v1678_v34 = vadd.f32 %v2234_v28, %v3219_v9  ;;  %v2237_v35 = vadd.f32 %v2236_v32, %v2235_v30  ;;  %v2349_v7 = vadd.f32 %v2348_v33, %v2347_v31 }
 0x27a   : > { %v1839_v36 = vadd.f32 %v2346_v29, %v1678_v34  ;;  %v1681_v8 = vadd.f32 %v2237_v35, %v3219_v9 }
 0x27c   : > { %1947 = vst [vmem:[%s3224_s13 + $0x30] sm:$0xff] %v1839_v36  ;;  %v1842_v37 = vadd.f32 %v2349_v7, %v1681_v8  ;;  %v2238_v38 = vpop.f32.mrb[80].mxu0  ;;  %v2350_v10 = vpop.f32.mrb[80].mxu1 }
 0x27d   : > { %v2239_v39 = vpop.f32.mrb[81].mxu0  ;;  %v2351_v40 = vpop.f32.mrb[81].mxu1 }
 0x27e   : > { %1948 = vst [vmem:[%s3224_s13 + $0x38] sm:$0xff] %v1842_v37  ;;  %v2240_v41 = vadd.f32 %v2239_v39, %v2238_v38  ;;  %v2352_v42 = vadd.f32 %v2351_v40, %v2350_v10  ;;  %v2241_v43 = vpop.f32.mrb[82].mxu0  ;;  %v2353_v44 = vpop.f32.mrb[82].mxu1 }
 0x27f   : > { %v2242_v45 = vpop.f32.mrb[83].mxu0  ;;  %v2354_v46 = vpop.f32.mrb[83].mxu1 }
 0x280   : > { %v1686_v47 = vadd.f32 %v2240_v41, %v3219_v9  ;;  %v2243_v48 = vadd.f32 %v2242_v45, %v2241_v43  ;;  %v2355_v49 = vadd.f32 %v2354_v46, %v2353_v44 }
 0x282   : > { %v1847_v50 = vadd.f32 %v2352_v42, %v1686_v47  ;;  %v1689_v51 = vadd.f32 %v2243_v48, %v3219_v9 }
 0x284   : > { %1949 = vst [vmem:[%s3224_s13 + $0x40] sm:$0xff] %v1847_v50  ;;  %v1850_v52 = vadd.f32 %v2355_v49, %v1689_v51  ;;  %v2244_v53 = vpop.f32.mrb[84].mxu0  ;;  %v2356_v54 = vpop.f32.mrb[84].mxu1 }
 0x285   : > { %v2245_v55 = vpop.f32.mrb[85].mxu0  ;;  %v2357_v56 = vpop.f32.mrb[85].mxu1 }
 0x286   : > { %1950 = vst [vmem:[%s3224_s13 + $0x48] sm:$0xff] %v1850_v52  ;;  %v2246_v57 = vadd.f32 %v2245_v55, %v2244_v53  ;;  %v2358_v58 = vadd.f32 %v2357_v56, %v2356_v54  ;;  %v2247_v59 = vpop.f32.mrb[86].mxu0  ;;  %v2359_v60 = vpop.f32.mrb[86].mxu1 }
 0x287   : > { %v2248_v61 = vpop.f32.mrb[87].mxu0  ;;  %v2360_v62 = vpop.f32.mrb[87].mxu1 }
 0x288   : > { %v1694_v63 = vadd.f32 %v2246_v57, %v3219_v9  ;;  %v2249_v0 = vadd.f32 %v2248_v61, %v2247_v59  ;;  %v2361_v1 = vadd.f32 %v2360_v62, %v2359_v60 }
 0x28a   : > { %v1855_v2 = vadd.f32 %v2358_v58, %v1694_v63  ;;  %v1697_v3 = vadd.f32 %v2249_v0, %v3219_v9 }
 0x28c   : > { %1951 = vst [vmem:[%s3224_s13 + $0x50] sm:$0xff] %v1855_v2  ;;  %v1858_v4 = vadd.f32 %v2361_v1, %v1697_v3  ;;  %v2250_v5 = vpop.f32.mrb[88].mxu0  ;;  %v2362_v6 = vpop.f32.mrb[88].mxu1 }
 0x28d   : > { %v2251_v11 = vpop.f32.mrb[89].mxu0  ;;  %v2363_v12 = vpop.f32.mrb[89].mxu1 }
 0x28e   : > { %1952 = vst [vmem:[%s3224_s13 + $0x58] sm:$0xff] %v1858_v4  ;;  %v2252_v13 = vadd.f32 %v2251_v11, %v2250_v5  ;;  %v2364_v14 = vadd.f32 %v2363_v12, %v2362_v6  ;;  %v2253_v15 = vpop.f32.mrb[90].mxu0  ;;  %v2365_v16 = vpop.f32.mrb[90].mxu1 }
 0x28f   : > { %v2254_v17 = vpop.f32.mrb[91].mxu0  ;;  %v2366_v18 = vpop.f32.mrb[91].mxu1 }
 0x290   : > { %v1702_v19 = vadd.f32 %v2252_v13, %v3219_v9  ;;  %v2255_v20 = vadd.f32 %v2254_v17, %v2253_v15  ;;  %v2367_v21 = vadd.f32 %v2366_v18, %v2365_v16 }
 0x292   : > { %v1863_v22 = vadd.f32 %v2364_v14, %v1702_v19  ;;  %v1705_v23 = vadd.f32 %v2255_v20, %v3219_v9 }
 0x294   : > { %1953 = vst [vmem:[%s3224_s13 + $0x60] sm:$0xff] %v1863_v22  ;;  %v1866_v24 = vadd.f32 %v2367_v21, %v1705_v23  ;;  %v2256_v25 = vpop.f32.mrb[92].mxu0  ;;  %v2368_v26 = vpop.f32.mrb[92].mxu1 }
 0x295   : > { %v2257_v27 = vpop.f32.mrb[93].mxu0  ;;  %v2369_v28 = vpop.f32.mrb[93].mxu1 }
 0x296   : > { %1954 = vst [vmem:[%s3224_s13 + $0x68] sm:$0xff] %v1866_v24  ;;  %v2258_v29 = vadd.f32 %v2257_v27, %v2256_v25  ;;  %v2370_v30 = vadd.f32 %v2369_v28, %v2368_v26  ;;  %v2259_v31 = vpop.f32.mrb[94].mxu0  ;;  %v2371_v32 = vpop.f32.mrb[94].mxu1 }
 0x297   : > { %v2260_v33 = vpop.f32.mrb[95].mxu0  ;;  %v2372_v34 = vpop.f32.mrb[95].mxu1 }
 0x298   : > { %v1710_v35 = vadd.f32 %v2258_v29, %v3219_v9  ;;  %v2261_v7 = vadd.f32 %v2260_v33, %v2259_v31  ;;  %v2373_v36 = vadd.f32 %v2372_v34, %v2371_v32 }
 0x29a   : > { %v1871_v8 = vadd.f32 %v2370_v30, %v1710_v35  ;;  %v1713_v37 = vadd.f32 %v2261_v7, %v3219_v9 }
 0x29c   : > { %1955 = vst [vmem:[%s3224_s13 + $0x70] sm:$0xff] %v1871_v8  ;;  %v1874_v38 = vadd.f32 %v2373_v36, %v1713_v37  ;;  %v2262_v10 = vpop.f32.mrb[96].mxu0  ;;  %v2374_v39 = vpop.f32.mrb[96].mxu1 }
 0x29d   : > { %v2263_v40 = vpop.f32.mrb[97].mxu0  ;;  %v2375_v41 = vpop.f32.mrb[97].mxu1 }
 0x29e   : > { %1956 = vst [vmem:[%s3224_s13 + $0x78] sm:$0xff] %v1874_v38  ;;  %v2264_v42 = vadd.f32 %v2263_v40, %v2262_v10  ;;  %v2376_v43 = vadd.f32 %v2375_v41, %v2374_v39  ;;  %v2265_v44 = vpop.f32.mrb[98].mxu0  ;;  %v2377_v45 = vpop.f32.mrb[98].mxu1 }
 0x29f   : > { %v2266_v46 = vpop.f32.mrb[99].mxu0  ;;  %v2378_v47 = vpop.f32.mrb[99].mxu1 }
 0x2a0   : > { %v1718_v48 = vadd.f32 %v2264_v42, %v3219_v9  ;;  %v2267_v49 = vadd.f32 %v2266_v46, %v2265_v44  ;;  %v2379_v50 = vadd.f32 %v2378_v47, %v2377_v45 }
 0x2a2   : > { %v1879_v51 = vadd.f32 %v2376_v43, %v1718_v48  ;;  %v1721_v52 = vadd.f32 %v2267_v49, %v3219_v9 }
 0x2a4   : > { %1957 = vst [vmem:[%s3224_s13 + $0x80] sm:$0xff] %v1879_v51  ;;  %v1882_v53 = vadd.f32 %v2379_v50, %v1721_v52  ;;  %v2268_v54 = vpop.f32.mrb[100].mxu0  ;;  %v2380_v55 = vpop.f32.mrb[100].mxu1 }
 0x2a5   : > { %v2269_v56 = vpop.f32.mrb[101].mxu0  ;;  %v2381_v57 = vpop.f32.mrb[101].mxu1 }
 0x2a6   : > { %1958 = vst [vmem:[%s3224_s13 + $0x88] sm:$0xff] %v1882_v53  ;;  %v2270_v58 = vadd.f32 %v2269_v56, %v2268_v54  ;;  %v2382_v59 = vadd.f32 %v2381_v57, %v2380_v55  ;;  %v2271_v60 = vpop.f32.mrb[102].mxu0  ;;  %v2383_v61 = vpop.f32.mrb[102].mxu1 }
 0x2a7   : > { %v2272_v62 = vpop.f32.mrb[103].mxu0  ;;  %v2384_v63 = vpop.f32.mrb[103].mxu1 }
 0x2a8   : > { %v1726_v0 = vadd.f32 %v2270_v58, %v3219_v9  ;;  %v2273_v1 = vadd.f32 %v2272_v62, %v2271_v60  ;;  %v2385_v2 = vadd.f32 %v2384_v63, %v2383_v61 }
 0x2aa   : > { %v1887_v3 = vadd.f32 %v2382_v59, %v1726_v0  ;;  %v1729_v4 = vadd.f32 %v2273_v1, %v3219_v9 }
 0x2ac   : > { %1959 = vst [vmem:[%s3224_s13 + $0x90] sm:$0xff] %v1887_v3  ;;  %v1890_v5 = vadd.f32 %v2385_v2, %v1729_v4  ;;  %v2274_v6 = vpop.f32.mrb[104].mxu0  ;;  %v2386_v11 = vpop.f32.mrb[104].mxu1 }
 0x2ad   : > { %v2275_v12 = vpop.f32.mrb[105].mxu0  ;;  %v2387_v13 = vpop.f32.mrb[105].mxu1 }
 0x2ae   : > { %1960 = vst [vmem:[%s3224_s13 + $0x98] sm:$0xff] %v1890_v5  ;;  %v2276_v14 = vadd.f32 %v2275_v12, %v2274_v6  ;;  %v2388_v15 = vadd.f32 %v2387_v13, %v2386_v11  ;;  %v2277_v16 = vpop.f32.mrb[106].mxu0  ;;  %v2389_v17 = vpop.f32.mrb[106].mxu1 }
 0x2af   : > { %v2278_v18 = vpop.f32.mrb[107].mxu0  ;;  %v2390_v19 = vpop.f32.mrb[107].mxu1 }
 0x2b0   : > { %v1734_v20 = vadd.f32 %v2276_v14, %v3219_v9  ;;  %v2279_v21 = vadd.f32 %v2278_v18, %v2277_v16  ;;  %v2391_v22 = vadd.f32 %v2390_v19, %v2389_v17 }
 0x2b2   : > { %v1895_v23 = vadd.f32 %v2388_v15, %v1734_v20  ;;  %v1737_v24 = vadd.f32 %v2279_v21, %v3219_v9 }
 0x2b4   : > { %1961 = vst [vmem:[%s3224_s13 + $0xa0] sm:$0xff] %v1895_v23  ;;  %v1898_v25 = vadd.f32 %v2391_v22, %v1737_v24  ;;  %v2280_v26 = vpop.f32.mrb[108].mxu0  ;;  %v2392_v27 = vpop.f32.mrb[108].mxu1 }
 0x2b5   : > { %v2281_v28 = vpop.f32.mrb[109].mxu0  ;;  %v2393_v29 = vpop.f32.mrb[109].mxu1 }
 0x2b6   : > { %1962 = vst [vmem:[%s3224_s13 + $0xa8] sm:$0xff] %v1898_v25  ;;  %v2282_v30 = vadd.f32 %v2281_v28, %v2280_v26  ;;  %v2394_v31 = vadd.f32 %v2393_v29, %v2392_v27  ;;  %v2283_v32 = vpop.f32.mrb[110].mxu0  ;;  %v2395_v33 = vpop.f32.mrb[110].mxu1 }
 0x2b7   : > { %v2284_v34 = vpop.f32.mrb[111].mxu0  ;;  %v2396_v35 = vpop.f32.mrb[111].mxu1 }
 0x2b8   : > { %v1742_v7 = vadd.f32 %v2282_v30, %v3219_v9  ;;  %v2285_v36 = vadd.f32 %v2284_v34, %v2283_v32  ;;  %v2397_v8 = vadd.f32 %v2396_v35, %v2395_v33 }
 0x2ba   : > { %v1903_v37 = vadd.f32 %v2394_v31, %v1742_v7  ;;  %v1745_v38 = vadd.f32 %v2285_v36, %v3219_v9 }
 0x2bc   : > { %1963 = vst [vmem:[%s3224_s13 + $0xb0] sm:$0xff] %v1903_v37  ;;  %v1906_v10 = vadd.f32 %v2397_v8, %v1745_v38  ;;  %v2286_v39 = vpop.f32.mrb[112].mxu0  ;;  %v2398_v40 = vpop.f32.mrb[112].mxu1 }
 0x2bd   : > { %v2287_v41 = vpop.f32.mrb[113].mxu0  ;;  %v2399_v42 = vpop.f32.mrb[113].mxu1 }
 0x2be   : > { %1964 = vst [vmem:[%s3224_s13 + $0xb8] sm:$0xff] %v1906_v10  ;;  %v2288_v43 = vadd.f32 %v2287_v41, %v2286_v39  ;;  %v2400_v44 = vadd.f32 %v2399_v42, %v2398_v40  ;;  %v2289_v45 = vpop.f32.mrb[114].mxu0  ;;  %v2401_v46 = vpop.f32.mrb[114].mxu1 }
 0x2bf   : > { %v2290_v47 = vpop.f32.mrb[115].mxu0  ;;  %v2402_v48 = vpop.f32.mrb[115].mxu1 }
 0x2c0   : > { %v1750_v49 = vadd.f32 %v2288_v43, %v3219_v9  ;;  %v2291_v50 = vadd.f32 %v2290_v47, %v2289_v45  ;;  %v2403_v51 = vadd.f32 %v2402_v48, %v2401_v46 }
 0x2c2   : > { %v1911_v52 = vadd.f32 %v2400_v44, %v1750_v49  ;;  %v1753_v53 = vadd.f32 %v2291_v50, %v3219_v9 }
 0x2c4   : > { %1965 = vst [vmem:[%s3224_s13 + $0xc0] sm:$0xff] %v1911_v52  ;;  %v1914_v54 = vadd.f32 %v2403_v51, %v1753_v53  ;;  %v2292_v55 = vpop.f32.mrb[116].mxu0  ;;  %v2404_v56 = vpop.f32.mrb[116].mxu1 }
 0x2c5   : > { %v2293_v57 = vpop.f32.mrb[117].mxu0  ;;  %v2405_v58 = vpop.f32.mrb[117].mxu1 }
 0x2c6   : > { %1966 = vst [vmem:[%s3224_s13 + $0xc8] sm:$0xff] %v1914_v54  ;;  %v2294_v59 = vadd.f32 %v2293_v57, %v2292_v55  ;;  %v2406_v60 = vadd.f32 %v2405_v58, %v2404_v56  ;;  %v2295_v61 = vpop.f32.mrb[118].mxu0  ;;  %v2407_v62 = vpop.f32.mrb[118].mxu1 }
 0x2c7   : > { %v2296_v63 = vpop.f32.mrb[119].mxu0  ;;  %v2408_v0 = vpop.f32.mrb[119].mxu1 }
 0x2c8   : > { %v1758_v1 = vadd.f32 %v2294_v59, %v3219_v9  ;;  %v2297_v2 = vadd.f32 %v2296_v63, %v2295_v61  ;;  %v2409_v3 = vadd.f32 %v2408_v0, %v2407_v62 }
 0x2ca   : > { %v1919_v4 = vadd.f32 %v2406_v60, %v1758_v1  ;;  %v1761_v5 = vadd.f32 %v2297_v2, %v3219_v9 }
 0x2cc   : > { %1967 = vst [vmem:[%s3224_s13 + $0xd0] sm:$0xff] %v1919_v4  ;;  %v1922_v6 = vadd.f32 %v2409_v3, %v1761_v5  ;;  %v2298_v11 = vpop.f32.mrb[120].mxu0  ;;  %v2410_v12 = vpop.f32.mrb[120].mxu1 }
 0x2cd   : > { %v2299_v13 = vpop.f32.mrb[121].mxu0  ;;  %v2411_v14 = vpop.f32.mrb[121].mxu1 }
 0x2ce   : > { %1968 = vst [vmem:[%s3224_s13 + $0xd8] sm:$0xff] %v1922_v6  ;;  %v2300_v15 = vadd.f32 %v2299_v13, %v2298_v11  ;;  %v2412_v16 = vadd.f32 %v2411_v14, %v2410_v12  ;;  %v2301_v17 = vpop.f32.mrb[122].mxu0  ;;  %v2413_v18 = vpop.f32.mrb[122].mxu1 }
 0x2cf   : > { %v2302_v19 = vpop.f32.mrb[123].mxu0  ;;  %v2414_v20 = vpop.f32.mrb[123].mxu1 }
 0x2d0   : > { %v1766_v21 = vadd.f32 %v2300_v15, %v3219_v9  ;;  %v2303_v22 = vadd.f32 %v2302_v19, %v2301_v17  ;;  %v2415_v23 = vadd.f32 %v2414_v20, %v2413_v18 }
 0x2d2   : > { %v1927_v24 = vadd.f32 %v2412_v16, %v1766_v21  ;;  %v1769_v25 = vadd.f32 %v2303_v22, %v3219_v9 }
 0x2d4   : > { %1969 = vst [vmem:[%s3224_s13 + $0xe0] sm:$0xff] %v1927_v24  ;;  %v1930_v26 = vadd.f32 %v2415_v23, %v1769_v25  ;;  %v2304_v27 = vpop.f32.mrb[124].mxu0  ;;  %v2416_v28 = vpop.f32.mrb[124].mxu1 }
 0x2d5   : > { %v2305_v29 = vpop.f32.mrb[125].mxu0  ;;  %v2417_v30 = vpop.f32.mrb[125].mxu1 }
 0x2d6   : > { %1970 = vst [vmem:[%s3224_s13 + $0xe8] sm:$0xff] %v1930_v26  ;;  %v2306_v31 = vadd.f32 %v2305_v29, %v2304_v27  ;;  %v2418_v32 = vadd.f32 %v2417_v30, %v2416_v28  ;;  %v2307_v33 = vpop.f32.mrb[126].mxu0  ;;  %v2419_v34 = vpop.f32.mrb[126].mxu1 }
 0x2d7   : > { %v2308_v35 = vpop.f32.mrb[127].mxu0  ;;  %v2420_v7 = vpop.f32.mrb[127].mxu1 }
 0x2d8   : > { %v1774_v36 = vadd.f32 %v2306_v31, %v3219_v9  ;;  %v2309_v8 = vadd.f32 %v2308_v35, %v2307_v33  ;;  %v2421_v37 = vadd.f32 %v2420_v7, %v2419_v34 }
 0x2da   : > { %v1935_v38 = vadd.f32 %v2418_v32, %v1774_v36  ;;  %v1777_v10 = vadd.f32 %v2309_v8, %v3219_v9 }
 0x2dc   : > { %1971 = vst [vmem:[%s3224_s13 + $0xf0] sm:$0xff] %v1935_v38  ;;  %v1938_v39 = vadd.f32 %v2421_v37, %v1777_v10 }
 0x2de   : > { %1972 = vst [vmem:[%s3224_s13 + $0xf8] sm:$0xff] %v1938_v39 }
 0x2df   : > { %2722 = shalt.err (!%p2719_p1)
}
 0x2e0   : > { %s2723_s24 = scalar_lea.hbm %s3291_s30, 4096  ;;  %s2727_s16 = scalar_lea.hbm %s3344_s5, 8192 }
 0x2e1   : > { %p2724_p13 = scmp.ne.s32.totalorder %s3291_s30, %s2723_s24  ;;  %p2728_p4 = scmp.lt.u32.totalorder %s3291_s30, %s3344_s5 }
 0x2e2   : > { %p2729_p7 = scmp.lt.u32.totalorder %s2727_s16, %s2723_s24  ;;  %p2731_p11 = scmp.lt.u32.totalorder %s2723_s24, %s3291_s30 }
 0x2e3   : > { %p2725_p6 = pnand %p2724_p13, %p3358_p0 }
 0x2e4   : > { %p2730_p8 = por %p2729_p7, %p2728_p4 }
 0x2e5   : > { %p2726_p10 = pneg %p2725_p6 }
 0x2e6   : > { %p2732_p2 = por %p2731_p11, %p2730_p8 }
 0x2e8   : > { %p2733_p3 = pnand %p2732_p2, %p2726_p10 }
 0x2ea   : > { %2736 = shalt.err (!%p2733_p3)
}
 0x2eb   : > { %s2789_s14 = smov 128   ;;  %s2790_s29 = smov 8  }
 0x2ec   : > { %2432 = dma.vmem_to_hbm [thread:$0]  (%p3358_p0), %s3293_s17, 4096, %s3291_s30, %s1974_s9, %s2789_s14, %s2789_s14, %s2790_s29  }
 0x2ed PF: > { %s2002_s12 = sand.u32 1, %s2767_s18   ;;  %p3359_p5 = scmp.ne.s32.totalorder %s3349_s25, 0 }
 0x2ee   : > { %p3360_p9 = scmp.ge.s32.totalorder %s2779_s21, 2  ;;  %s2003_s6 = scalar_lea.sflag [#allocation4], %s2002_s12 }
 0x2f0   : > { %p2446_p12 = pnand %p3360_p9, %p3359_p5 }
 0x2f2   : > { %2762 = dma.done.wait (!%p2446_p12), %s2003_s6, 4096  }
 0x2f3   : > { %2764 = vsyncadd (!%p2446_p12), %s2003_s6, 4294963200  ;;  %p19_p1 = scmp.ge.s32.totalorder %s2934_s23, 4   ;;  %s3361_s18 = smov %s2771_s19 }
 0x2f4   : > { %s3362_s19 = smov %s2775_s20  ;;  %s3363_s20 = smov %s2943_s7 }
 0x2f5   : > { %s3364_s21 = smov %s2934_s23  ;;  %21 = sbr.rel (!%p19_p1) target bundleno = 6 (0x6), region = 93 }
 0x2fc   :  { %2008 = vsyncpa [#allocation3], 1 }
 0x2fd   :  { %2010 = vsyncpa [#allocation3 + $0x1], 1 }
 0x2fe   :  { %2011 = vsyncpa [#allocation6], 1 }
 0x2ff   :  { %2012 = vsyncpa [#allocation4], 1 }
 0x300   :  { %2014 = vsyncpa [#allocation4 + $0x1], 1 }

</bundles_post_ra>
